<compile_context>
chip_gen: v7x
topology: tpu7x:2x2x1
jax: 0.10.0
libtpu: 0.0.40
codegen_flags: <defaults>
</compile_context>

<pallas_src>
import jax
import jax.numpy as jnp
from jax.experimental import pallas as pl
from jax.experimental.pallas import tpu as pltpu

H = 32  # LSTM hidden size (fixed by the module)


# ----------------------------------------------------------------------------
# Weight packing helpers (run once on the wrapper side).
# Combined gate layout (8H = 256 lanes):  [i_f i_b | f_f f_b | o_f o_b | g_f g_b]
# (all sigmoid gates contiguous in the first 3*2H lanes, tanh gate last).
# PyTorch 4H gate order in the source weights is (i, f, g, o).
# ----------------------------------------------------------------------------
def _pad_cols_fwd(w):
    """(R, 4H) fwd-direction gates -> (R, 8H) placed at even gate slots."""
    R = w.shape[0]
    z = jnp.zeros((R, H), w.dtype)
    w_i, w_f, w_g, w_o = w[:, 0:H], w[:, H:2 * H], w[:, 2 * H:3 * H], w[:, 3 * H:4 * H]
    return jnp.concatenate([w_i, z, w_f, z, w_o, z, w_g, z], axis=1)


def _pad_cols_bwd(w):
    """(R, 4H) bwd-direction gates -> (R, 8H) placed at odd gate slots."""
    R = w.shape[0]
    z = jnp.zeros((R, H), w.dtype)
    w_i, w_f, w_g, w_o = w[:, 0:H], w[:, H:2 * H], w[:, 2 * H:3 * H], w[:, 3 * H:4 * H]
    return jnp.concatenate([z, w_i, z, w_f, z, w_o, z, w_g], axis=1)


def _prepare_params(p, D, C):
    """Build merged / padded weights consumed by the kernel."""
    q = {}
    # encoder input projection: stacked [fwd; bwd] so x_pair=(x_t, x_{T-1-t}) needs ONE matmul
    q["we_pair"] = jnp.concatenate(
        [_pad_cols_fwd(p["we_ihf"]), _pad_cols_bwd(p["we_ihb"])], axis=0)   # (2D, 8H)
    q["be_pair"] = _pad_cols_fwd(p["we_bf"]) + _pad_cols_bwd(p["we_bb"])    # (1, 8H)
    # encoder recurrence (block structure: h_f -> fwd gate cols, h_b -> bwd gate cols)
    q["whe"] = jnp.concatenate(
        [_pad_cols_fwd(p["we_hhf"]), _pad_cols_bwd(p["we_hhb"])], axis=0)   # (2H, 8H)
    # decoder: constant input -> single combined input projection, split by row so the
    # encoder->decoder handoff needs no lane concat
    wd = _pad_cols_fwd(p["wd_ihf"]) + _pad_cols_bwd(p["wd_ihb"])            # (2H, 8H)
    q["wd_top"] = wd[0:H, :]                                                # (H, 8H)
    q["wd_bot"] = wd[H:2 * H, :]                                            # (H, 8H)
    q["bd"] = _pad_cols_fwd(p["wd_bf"]) + _pad_cols_bwd(p["wd_bb"])         # (1, 8H)
    q["whd"] = jnp.concatenate(
        [_pad_cols_fwd(p["wd_hhf"]), _pad_cols_bwd(p["wd_hhb"])], axis=0)   # (2H, 8H)
    # fused fc + classifier (exact: no nonlinearity between them; needs D == 64),
    # split by row to match the two decoder-output scratch buffers
    wcomb = p["fc_w"] @ p["ow"]                                # (2H, C)
    bcomb = p["fc_b"] @ p["ow"] + p["ob"]                      # (1, C)
    cpad = max(128, ((C + 127) // 128) * 128)
    wc = jnp.zeros((2 * H, cpad), jnp.float32).at[:, :C].set(wcomb)
    q["wc_top"] = wc[0:H, :]                                   # (H, cpad)
    q["wc_bot"] = wc[H:2 * H, :]                               # (H, cpad)
    q["bc"] = jnp.zeros((1, cpad), jnp.float32).at[:, :C].set(bcomb)
    q["cpad"] = cpad
    return q


# ----------------------------------------------------------------------------
# Kernel
# ----------------------------------------------------------------------------
def _make_kernel(T, B):
    TWO = 2 * H

    def cell(pre, h, c, w_hh):
        """Merged fwd+bwd LSTM cell. h, c: (B, 2H); pre: (B, 8H) input contribution."""
        g = pre + jnp.dot(h, w_hh, preferred_element_type=jnp.float32)
        sig = jax.nn.sigmoid(g[:, 0:3 * TWO])        # [i_f i_b | f_f f_b | o_f o_b]
        g_g = jnp.tanh(g[:, 3 * TWO:4 * TWO])        # [g_f g_b]
        i_g = sig[:, 0 * TWO:1 * TWO]
        f_g = sig[:, 1 * TWO:2 * TWO]
        o_g = sig[:, 2 * TWO:3 * TWO]
        c = f_g * c + i_g * g_g
        h = o_g * jnp.tanh(c)
        return h, c

    def kernel(xp_ref, wep_ref, bep_ref, whe_ref,
               wdt_ref, wdb_ref, bd_ref, whd_ref,
               wct_ref, wcb_ref, bc_ref,
               out_ref, decf_ref, decb_ref):
        # ----- encoder prologue: ONE (T*B, 2D) @ (2D, 8H) matmul gives pre_all -----
        pre_all = (jnp.dot(xp_ref[...], wep_ref[...],
                           preferred_element_type=jnp.float32) + bep_ref[...])
        whe = whe_ref[...]

        h = jnp.zeros((B, TWO), jnp.float32)
        c = jnp.zeros((B, TWO), jnp.float32)
        h_b_last = None
        for s in range(T):
            # fwd processes time t=s, bwd processes time t=T-1-s (already paired in pre_all)
            h, c = cell(pre_all[s * B:(s + 1) * B, :], h, c, whe)
            if s == 0:
                h_b_last = h[:, H:TWO]     # bwd hidden at time T-1 (its first step)

        # ----- encoder -> decoder handoff without a lane concat (split wd rows) -----
        pre_dec = (jnp.dot(h[:, 0:H], wdt_ref[...], preferred_element_type=jnp.float32)
                   + jnp.dot(h_b_last, wdb_ref[...], preferred_element_type=jnp.float32)
                   + bd_ref[...])                                   # (B, 8H) constant input

        # ----- decoder recurrence, per-step stores into VMEM scratch -----
        whd = whd_ref[...]
        h = jnp.zeros((B, TWO), jnp.float32)
        c = jnp.zeros((B, TWO), jnp.float32)
        for s in range(T):
            h, c = cell(pre_dec, h, c, whd)
            decf_ref[s * B:(s + 1) * B, :] = h[:, 0:H]                # fwd out, time t = s
            decb_ref[(T - 1 - s) * B:(T - s) * B, :] = h[:, H:TWO]    # bwd out, time t = T-1-s

        # ----- fused fc + classifier: two small matmuls, one lane-dense store -----
        out_ref[...] = (jnp.dot(decf_ref[...], wct_ref[...], preferred_element_type=jnp.float32)
                        + jnp.dot(decb_ref[...], wcb_ref[...], preferred_element_type=jnp.float32)
                        + bc_ref[...])

    return kernel


def lstm_autoencoder(x, p):
    T, B, D = x.shape
    # view(-1, 64) in the module is only row-preserving when input_size == 64.
    assert D == 2 * H, "LSTM_Autoencoder's view(-1, 64) requires input_size == 64"
    C = p["ob"].shape[-1]
    q = _prepare_params(p, D, C)
    # pair x_t (fwd) with x_{T-1-t} (bwd): row t*B+b = [x[t,b,:], x[T-1-t,b,:]]
    x_pair = jnp.concatenate([x, x[::-1]], axis=-1).reshape(T * B, 2 * D)

    args = [x_pair,
            q["we_pair"], q["be_pair"], q["whe"],
            q["wd_top"], q["wd_bot"], q["bd"], q["whd"],
            q["wc_top"], q["wc_bot"], q["bc"]]
    vmem = pltpu.MemorySpace.VMEM
    out_pad = pl.pallas_call(
        _make_kernel(T, B),
        out_shape=jax.ShapeDtypeStruct((T * B, q["cpad"]), jnp.float32),
        in_specs=[pl.BlockSpec(memory_space=vmem) for _ in args],
        out_specs=pl.BlockSpec(memory_space=vmem),
        scratch_shapes=[pltpu.VMEM((T * B, H), jnp.float32),   # decoder fwd outputs
                        pltpu.VMEM((T * B, H), jnp.float32)],  # decoder bwd outputs
    )(*args)
    return out_pad[:, :C]


# ----------------------------------------------------------------------------
# Params + pure-JAX reference (original unfused math, for verification)
# ----------------------------------------------------------------------------
def init_params(key, D, C):
    """Deterministic synthetic params mirroring the nn.Module shapes/init scale."""
    keys = jax.random.split(key, 24)
    it = iter(keys)

    def u(shape, bound):
        return jax.random.uniform(next(it), shape, jnp.float32, -bound, bound)

    k_lstm = 1.0 / float(jnp.sqrt(jnp.float32(H)))

    def lstm_dir_params(din):
        w_ih = u((4 * H, din), k_lstm)      # torch weight_ih_l0[_reverse]
        w_hh = u((4 * H, H), k_lstm)        # torch weight_hh_l0[_reverse]
        b_ih = u((4 * H,), k_lstm)
        b_hh = u((4 * H,), k_lstm)
        return w_ih.T, w_hh.T, (b_ih + b_hh).reshape(1, 4 * H)

    p = {}
    p["we_ihf"], p["we_hhf"], p["we_bf"] = lstm_dir_params(D)
    p["we_ihb"], p["we_hhb"], p["we_bb"] = lstm_dir_params(D)
    p["wd_ihf"], p["wd_hhf"], p["wd_bf"] = lstm_dir_params(2 * H)
    p["wd_ihb"], p["wd_hhb"], p["wd_bb"] = lstm_dir_params(2 * H)

    k_fc = 1.0 / float(jnp.sqrt(jnp.float32(2 * H)))
    p["fc_w"] = u((D, 2 * H), k_fc).T            # (64, D)
    p["fc_b"] = u((D,), k_fc).reshape(1, D)
    p["ow"] = u((C, 2 * H), k_fc).T              # (64, C)
    p["ob"] = u((C,), k_fc).reshape(1, C)
    return p


def _lstm_dir_ref(xs, w_ih_t, w_hh_t, b, reverse):
    """Reference single-direction LSTM, PyTorch gate order (i, f, g, o)."""
    T = len(xs)
    B = xs[0].shape[0]
    h = jnp.zeros((B, H), jnp.float32)
    c = jnp.zeros((B, H), jnp.float32)
    outs = [None] * T
    order = range(T - 1, -1, -1) if reverse else range(T)
    for t in order:
        g = xs[t] @ w_ih_t + h @ w_hh_t + b
        i_g = jax.nn.sigmoid(g[:, 0 * H:1 * H])
        f_g = jax.nn.sigmoid(g[:, 1 * H:2 * H])
        g_g = jnp.tanh(g[:, 2 * H:3 * H])
        o_g = jax.nn.sigmoid(g[:, 3 * H:4 * H])
        c = f_g * c + i_g * g_g
        h = o_g * jnp.tanh(c)
        outs[t] = h
    return outs


def reference_forward(x, p):
    """Pure-JAX reference (original unfused per-direction math, outside Pallas)."""
    T, B, _ = x.shape
    xs = [x[t] for t in range(T)]
    enc_f = _lstm_dir_ref(xs, p["we_ihf"], p["we_hhf"], p["we_bf"], False)
    enc_b = _lstm_dir_ref(xs, p["we_ihb"], p["we_hhb"], p["we_bb"], True)
    last = jnp.concatenate([enc_f[T - 1], enc_b[T - 1]], axis=-1)
    dec_in = [last] * T
    dec_f = _lstm_dir_ref(dec_in, p["wd_ihf"], p["wd_hhf"], p["wd_bf"], False)
    dec_b = _lstm_dir_ref(dec_in, p["wd_ihb"], p["wd_hhb"], p["wd_bb"], True)
    rows = []
    for t in range(T):
        d = jnp.concatenate([dec_f[t], dec_b[t]], axis=-1)
        y = d @ p["fc_w"] + p["fc_b"]
        rows.append(y @ p["ow"] + p["ob"])
    return jnp.concatenate(rows, axis=0)


if __name__ == "__main__":
    T, B, D, C = 8, 2, 64, 10   # seq_len, batch, input_shape[1], num_classes

    key = jax.random.PRNGKey(0)
    kx, kp = jax.random.split(key)
    x = jax.random.normal(kx, (T, B, D), jnp.float32)
    params = init_params(kp, D, C)

    out = lstm_autoencoder(x, params)
    out = jax.block_until_ready(out)

    ref = jax.block_until_ready(reference_forward(x, params))
    assert out.shape == (T * B, C), out.shape
    assert bool(jnp.all(jnp.isfinite(out)))
    assert bool(jnp.allclose(out, ref, atol=1e-3, rtol=1e-3)), (
        float(jnp.max(jnp.abs(out - ref))))

    print("KERNEL_OK")
</pallas_src>

<mosaic_0001>
module attributes {stable_mosaic.version = 11 : i64} {
  func.func @kernel(%arg0: memref<16x128xf32, #tpu.memory_space<vmem>>, %arg1: memref<128x256xf32, #tpu.memory_space<vmem>>, %arg2: memref<1x256xf32, #tpu.memory_space<vmem>>, %arg3: memref<64x256xf32, #tpu.memory_space<vmem>>, %arg4: memref<32x256xf32, #tpu.memory_space<vmem>>, %arg5: memref<32x256xf32, #tpu.memory_space<vmem>>, %arg6: memref<1x256xf32, #tpu.memory_space<vmem>>, %arg7: memref<64x256xf32, #tpu.memory_space<vmem>>, %arg8: memref<32x128xf32, #tpu.memory_space<vmem>>, %arg9: memref<32x128xf32, #tpu.memory_space<vmem>>, %arg10: memref<1x128xf32, #tpu.memory_space<vmem>>, %arg11: memref<16x128xf32, #tpu.memory_space<vmem>>, %arg12: memref<16x32xf32, #tpu.memory_space<vmem>>, %arg13: memref<16x32xf32, #tpu.memory_space<vmem>>) attributes {dimension_semantics = [], scalar_prefetch = 0 : i64, scratch_operands = 2 : i64, tpu.core_type = #tpu.core_type<tc>} {
    %c0 = arith.constant 0 : index
    %c0_0 = arith.constant 0 : index
    %0 = vector.load %arg0[%c0, %c0_0] : memref<16x128xf32, #tpu.memory_space<vmem>>, vector<16x128xf32>
    %c0_1 = arith.constant 0 : index
    %c0_2 = arith.constant 0 : index
    %1 = vector.load %arg1[%c0_1, %c0_2] : memref<128x256xf32, #tpu.memory_space<vmem>>, vector<128x256xf32>
    %cst = arith.constant dense<0.000000e+00> : vector<16x256xf32>
    %2 = tpu.matmul %0, %1, %cst {dimension_numbers = #tpu.dot_dimension_numbers<[1], [0], [0], [1], [0, 0, 1, 1], [], []>} : vector<16x128xf32>, vector<128x256xf32>, vector<16x256xf32> -> vector<16x256xf32>
    %c0_3 = arith.constant 0 : index
    %c0_4 = arith.constant 0 : index
    %3 = vector.load %arg2[%c0_3, %c0_4] : memref<1x256xf32, #tpu.memory_space<vmem>>, vector<1x256xf32>
    %4 = vector.broadcast %3 : vector<1x256xf32> to vector<16x256xf32>
    %5 = arith.addf %2, %4 : vector<16x256xf32>
    %c0_5 = arith.constant 0 : index
    %c0_6 = arith.constant 0 : index
    %6 = vector.load %arg3[%c0_5, %c0_6] : memref<64x256xf32, #tpu.memory_space<vmem>>, vector<64x256xf32>
    %cst_7 = arith.constant 0.000000e+00 : f32
    %7 = vector.broadcast %cst_7 : f32 to vector<2x64xf32>
    %cst_8 = arith.constant 0.000000e+00 : f32
    %8 = vector.broadcast %cst_8 : f32 to vector<2x64xf32>
    %9 = vector.extract_strided_slice %5 {offsets = [0, 0], sizes = [2, 256], strides = [1, 1]} : vector<16x256xf32> to vector<2x256xf32>
    %cst_9 = arith.constant dense<0.000000e+00> : vector<2x256xf32>
    %10 = tpu.matmul %7, %6, %cst_9 {dimension_numbers = #tpu.dot_dimension_numbers<[1], [0], [0], [1], [0, 0, 1, 1], [], []>} : vector<2x64xf32>, vector<64x256xf32>, vector<2x256xf32> -> vector<2x256xf32>
    %11 = arith.addf %9, %10 : vector<2x256xf32>
    %12 = vector.extract_strided_slice %11 {offsets = [0, 0], sizes = [2, 192], strides = [1, 1]} : vector<2x256xf32> to vector<2x192xf32>
    %13 = arith.negf %12 : vector<2x192xf32>
    %14 = math.exp %13 : vector<2x192xf32>
    %cst_10 = arith.constant 1.000000e+00 : f32
    %15 = vector.broadcast %cst_10 : f32 to vector<2x192xf32>
    %16 = arith.addf %15, %14 : vector<2x192xf32>
    %17 = arith.divf %15, %16 : vector<2x192xf32>
    %18 = vector.extract_strided_slice %11 {offsets = [0, 192], sizes = [2, 64], strides = [1, 1]} : vector<2x256xf32> to vector<2x64xf32>
    %19 = math.tanh %18 : vector<2x64xf32>
    %20 = vector.extract_strided_slice %17 {offsets = [0, 0], sizes = [2, 64], strides = [1, 1]} : vector<2x192xf32> to vector<2x64xf32>
    %21 = vector.extract_strided_slice %17 {offsets = [0, 64], sizes = [2, 64], strides = [1, 1]} : vector<2x192xf32> to vector<2x64xf32>
    %22 = vector.extract_strided_slice %17 {offsets = [0, 128], sizes = [2, 64], strides = [1, 1]} : vector<2x192xf32> to vector<2x64xf32>
    %23 = arith.mulf %21, %8 : vector<2x64xf32>
    %24 = arith.mulf %20, %19 : vector<2x64xf32>
    %25 = arith.addf %23, %24 : vector<2x64xf32>
    %26 = math.tanh %25 : vector<2x64xf32>
    %27 = arith.mulf %22, %26 : vector<2x64xf32>
    %28 = vector.extract_strided_slice %27 {offsets = [0, 32], sizes = [2, 32], strides = [1, 1]} : vector<2x64xf32> to vector<2x32xf32>
    %29 = vector.extract_strided_slice %5 {offsets = [2, 0], sizes = [2, 256], strides = [1, 1]} : vector<16x256xf32> to vector<2x256xf32>
    %cst_11 = arith.constant dense<0.000000e+00> : vector<2x256xf32>
    %30 = tpu.matmul %27, %6, %cst_11 {dimension_numbers = #tpu.dot_dimension_numbers<[1], [0], [0], [1], [0, 0, 1, 1], [], []>} : vector<2x64xf32>, vector<64x256xf32>, vector<2x256xf32> -> vector<2x256xf32>
    %31 = arith.addf %29, %30 : vector<2x256xf32>
    %32 = vector.extract_strided_slice %31 {offsets = [0, 0], sizes = [2, 192], strides = [1, 1]} : vector<2x256xf32> to vector<2x192xf32>
    %33 = arith.negf %32 : vector<2x192xf32>
    %34 = math.exp %33 : vector<2x192xf32>
    %cst_12 = arith.constant 1.000000e+00 : f32
    %35 = vector.broadcast %cst_12 : f32 to vector<2x192xf32>
    %36 = arith.addf %35, %34 : vector<2x192xf32>
    %37 = arith.divf %35, %36 : vector<2x192xf32>
    %38 = vector.extract_strided_slice %31 {offsets = [0, 192], sizes = [2, 64], strides = [1, 1]} : vector<2x256xf32> to vector<2x64xf32>
    %39 = math.tanh %38 : vector<2x64xf32>
    %40 = vector.extract_strided_slice %37 {offsets = [0, 0], sizes = [2, 64], strides = [1, 1]} : vector<2x192xf32> to vector<2x64xf32>
    %41 = vector.extract_strided_slice %37 {offsets = [0, 64], sizes = [2, 64], strides = [1, 1]} : vector<2x192xf32> to vector<2x64xf32>
    %42 = vector.extract_strided_slice %37 {offsets = [0, 128], sizes = [2, 64], strides = [1, 1]} : vector<2x192xf32> to vector<2x64xf32>
    %43 = arith.mulf %41, %25 : vector<2x64xf32>
    %44 = arith.mulf %40, %39 : vector<2x64xf32>
    %45 = arith.addf %43, %44 : vector<2x64xf32>
    %46 = math.tanh %45 : vector<2x64xf32>
    %47 = arith.mulf %42, %46 : vector<2x64xf32>
    %48 = vector.extract_strided_slice %5 {offsets = [4, 0], sizes = [2, 256], strides = [1, 1]} : vector<16x256xf32> to vector<2x256xf32>
    %cst_13 = arith.constant dense<0.000000e+00> : vector<2x256xf32>
    %49 = tpu.matmul %47, %6, %cst_13 {dimension_numbers = #tpu.dot_dimension_numbers<[1], [0], [0], [1], [0, 0, 1, 1], [], []>} : vector<2x64xf32>, vector<64x256xf32>, vector<2x256xf32> -> vector<2x256xf32>
    %50 = arith.addf %48, %49 : vector<2x256xf32>
    %51 = vector.extract_strided_slice %50 {offsets = [0, 0], sizes = [2, 192], strides = [1, 1]} : vector<2x256xf32> to vector<2x192xf32>
    %52 = arith.negf %51 : vector<2x192xf32>
    %53 = math.exp %52 : vector<2x192xf32>
    %cst_14 = arith.constant 1.000000e+00 : f32
    %54 = vector.broadcast %cst_14 : f32 to vector<2x192xf32>
    %55 = arith.addf %54, %53 : vector<2x192xf32>
    %56 = arith.divf %54, %55 : vector<2x192xf32>
    %57 = vector.extract_strided_slice %50 {offsets = [0, 192], sizes = [2, 64], strides = [1, 1]} : vector<2x256xf32> to vector<2x64xf32>
    %58 = math.tanh %57 : vector<2x64xf32>
    %59 = vector.extract_strided_slice %56 {offsets = [0, 0], sizes = [2, 64], strides = [1, 1]} : vector<2x192xf32> to vector<2x64xf32>
    %60 = vector.extract_strided_slice %56 {offsets = [0, 64], sizes = [2, 64], strides = [1, 1]} : vector<2x192xf32> to vector<2x64xf32>
    %61 = vector.extract_strided_slice %56 {offsets = [0, 128], sizes = [2, 64], strides = [1, 1]} : vector<2x192xf32> to vector<2x64xf32>
    %62 = arith.mulf %60, %45 : vector<2x64xf32>
    %63 = arith.mulf %59, %58 : vector<2x64xf32>
    %64 = arith.addf %62, %63 : vector<2x64xf32>
    %65 = math.tanh %64 : vector<2x64xf32>
    %66 = arith.mulf %61, %65 : vector<2x64xf32>
    %67 = vector.extract_strided_slice %5 {offsets = [6, 0], sizes = [2, 256], strides = [1, 1]} : vector<16x256xf32> to vector<2x256xf32>
    %cst_15 = arith.constant dense<0.000000e+00> : vector<2x256xf32>
    %68 = tpu.matmul %66, %6, %cst_15 {dimension_numbers = #tpu.dot_dimension_numbers<[1], [0], [0], [1], [0, 0, 1, 1], [], []>} : vector<2x64xf32>, vector<64x256xf32>, vector<2x256xf32> -> vector<2x256xf32>
    %69 = arith.addf %67, %68 : vector<2x256xf32>
    %70 = vector.extract_strided_slice %69 {offsets = [0, 0], sizes = [2, 192], strides = [1, 1]} : vector<2x256xf32> to vector<2x192xf32>
    %71 = arith.negf %70 : vector<2x192xf32>
    %72 = math.exp %71 : vector<2x192xf32>
    %cst_16 = arith.constant 1.000000e+00 : f32
    %73 = vector.broadcast %cst_16 : f32 to vector<2x192xf32>
    %74 = arith.addf %73, %72 : vector<2x192xf32>
    %75 = arith.divf %73, %74 : vector<2x192xf32>
    %76 = vector.extract_strided_slice %69 {offsets = [0, 192], sizes = [2, 64], strides = [1, 1]} : vector<2x256xf32> to vector<2x64xf32>
    %77 = math.tanh %76 : vector<2x64xf32>
    %78 = vector.extract_strided_slice %75 {offsets = [0, 0], sizes = [2, 64], strides = [1, 1]} : vector<2x192xf32> to vector<2x64xf32>
    %79 = vector.extract_strided_slice %75 {offsets = [0, 64], sizes = [2, 64], strides = [1, 1]} : vector<2x192xf32> to vector<2x64xf32>
    %80 = vector.extract_strided_slice %75 {offsets = [0, 128], sizes = [2, 64], strides = [1, 1]} : vector<2x192xf32> to vector<2x64xf32>
    %81 = arith.mulf %79, %64 : vector<2x64xf32>
    %82 = arith.mulf %78, %77 : vector<2x64xf32>
    %83 = arith.addf %81, %82 : vector<2x64xf32>
    %84 = math.tanh %83 : vector<2x64xf32>
    %85 = arith.mulf %80, %84 : vector<2x64xf32>
    %86 = vector.extract_strided_slice %5 {offsets = [8, 0], sizes = [2, 256], strides = [1, 1]} : vector<16x256xf32> to vector<2x256xf32>
    %cst_17 = arith.constant dense<0.000000e+00> : vector<2x256xf32>
    %87 = tpu.matmul %85, %6, %cst_17 {dimension_numbers = #tpu.dot_dimension_numbers<[1], [0], [0], [1], [0, 0, 1, 1], [], []>} : vector<2x64xf32>, vector<64x256xf32>, vector<2x256xf32> -> vector<2x256xf32>
    %88 = arith.addf %86, %87 : vector<2x256xf32>
    %89 = vector.extract_strided_slice %88 {offsets = [0, 0], sizes = [2, 192], strides = [1, 1]} : vector<2x256xf32> to vector<2x192xf32>
    %90 = arith.negf %89 : vector<2x192xf32>
    %91 = math.exp %90 : vector<2x192xf32>
    %cst_18 = arith.constant 1.000000e+00 : f32
    %92 = vector.broadcast %cst_18 : f32 to vector<2x192xf32>
    %93 = arith.addf %92, %91 : vector<2x192xf32>
    %94 = arith.divf %92, %93 : vector<2x192xf32>
    %95 = vector.extract_strided_slice %88 {offsets = [0, 192], sizes = [2, 64], strides = [1, 1]} : vector<2x256xf32> to vector<2x64xf32>
    %96 = math.tanh %95 : vector<2x64xf32>
    %97 = vector.extract_strided_slice %94 {offsets = [0, 0], sizes = [2, 64], strides = [1, 1]} : vector<2x192xf32> to vector<2x64xf32>
    %98 = vector.extract_strided_slice %94 {offsets = [0, 64], sizes = [2, 64], strides = [1, 1]} : vector<2x192xf32> to vector<2x64xf32>
    %99 = vector.extract_strided_slice %94 {offsets = [0, 128], sizes = [2, 64], strides = [1, 1]} : vector<2x192xf32> to vector<2x64xf32>
    %100 = arith.mulf %98, %83 : vector<2x64xf32>
    %101 = arith.mulf %97, %96 : vector<2x64xf32>
    %102 = arith.addf %100, %101 : vector<2x64xf32>
    %103 = math.tanh %102 : vector<2x64xf32>
    %104 = arith.mulf %99, %103 : vector<2x64xf32>
    %105 = vector.extract_strided_slice %5 {offsets = [10, 0], sizes = [2, 256], strides = [1, 1]} : vector<16x256xf32> to vector<2x256xf32>
    %cst_19 = arith.constant dense<0.000000e+00> : vector<2x256xf32>
    %106 = tpu.matmul %104, %6, %cst_19 {dimension_numbers = #tpu.dot_dimension_numbers<[1], [0], [0], [1], [0, 0, 1, 1], [], []>} : vector<2x64xf32>, vector<64x256xf32>, vector<2x256xf32> -> vector<2x256xf32>
    %107 = arith.addf %105, %106 : vector<2x256xf32>
    %108 = vector.extract_strided_slice %107 {offsets = [0, 0], sizes = [2, 192], strides = [1, 1]} : vector<2x256xf32> to vector<2x192xf32>
    %109 = arith.negf %108 : vector<2x192xf32>
    %110 = math.exp %109 : vector<2x192xf32>
    %cst_20 = arith.constant 1.000000e+00 : f32
    %111 = vector.broadcast %cst_20 : f32 to vector<2x192xf32>
    %112 = arith.addf %111, %110 : vector<2x192xf32>
    %113 = arith.divf %111, %112 : vector<2x192xf32>
    %114 = vector.extract_strided_slice %107 {offsets = [0, 192], sizes = [2, 64], strides = [1, 1]} : vector<2x256xf32> to vector<2x64xf32>
    %115 = math.tanh %114 : vector<2x64xf32>
    %116 = vector.extract_strided_slice %113 {offsets = [0, 0], sizes = [2, 64], strides = [1, 1]} : vector<2x192xf32> to vector<2x64xf32>
    %117 = vector.extract_strided_slice %113 {offsets = [0, 64], sizes = [2, 64], strides = [1, 1]} : vector<2x192xf32> to vector<2x64xf32>
    %118 = vector.extract_strided_slice %113 {offsets = [0, 128], sizes = [2, 64], strides = [1, 1]} : vector<2x192xf32> to vector<2x64xf32>
    %119 = arith.mulf %117, %102 : vector<2x64xf32>
    %120 = arith.mulf %116, %115 : vector<2x64xf32>
    %121 = arith.addf %119, %120 : vector<2x64xf32>
    %122 = math.tanh %121 : vector<2x64xf32>
    %123 = arith.mulf %118, %122 : vector<2x64xf32>
    %124 = vector.extract_strided_slice %5 {offsets = [12, 0], sizes = [2, 256], strides = [1, 1]} : vector<16x256xf32> to vector<2x256xf32>
    %cst_21 = arith.constant dense<0.000000e+00> : vector<2x256xf32>
    %125 = tpu.matmul %123, %6, %cst_21 {dimension_numbers = #tpu.dot_dimension_numbers<[1], [0], [0], [1], [0, 0, 1, 1], [], []>} : vector<2x64xf32>, vector<64x256xf32>, vector<2x256xf32> -> vector<2x256xf32>
    %126 = arith.addf %124, %125 : vector<2x256xf32>
    %127 = vector.extract_strided_slice %126 {offsets = [0, 0], sizes = [2, 192], strides = [1, 1]} : vector<2x256xf32> to vector<2x192xf32>
    %128 = arith.negf %127 : vector<2x192xf32>
    %129 = math.exp %128 : vector<2x192xf32>
    %cst_22 = arith.constant 1.000000e+00 : f32
    %130 = vector.broadcast %cst_22 : f32 to vector<2x192xf32>
    %131 = arith.addf %130, %129 : vector<2x192xf32>
    %132 = arith.divf %130, %131 : vector<2x192xf32>
    %133 = vector.extract_strided_slice %126 {offsets = [0, 192], sizes = [2, 64], strides = [1, 1]} : vector<2x256xf32> to vector<2x64xf32>
    %134 = math.tanh %133 : vector<2x64xf32>
    %135 = vector.extract_strided_slice %132 {offsets = [0, 0], sizes = [2, 64], strides = [1, 1]} : vector<2x192xf32> to vector<2x64xf32>
    %136 = vector.extract_strided_slice %132 {offsets = [0, 64], sizes = [2, 64], strides = [1, 1]} : vector<2x192xf32> to vector<2x64xf32>
    %137 = vector.extract_strided_slice %132 {offsets = [0, 128], sizes = [2, 64], strides = [1, 1]} : vector<2x192xf32> to vector<2x64xf32>
    %138 = arith.mulf %136, %121 : vector<2x64xf32>
    %139 = arith.mulf %135, %134 : vector<2x64xf32>
    %140 = arith.addf %138, %139 : vector<2x64xf32>
    %141 = math.tanh %140 : vector<2x64xf32>
    %142 = arith.mulf %137, %141 : vector<2x64xf32>
    %143 = vector.extract_strided_slice %5 {offsets = [14, 0], sizes = [2, 256], strides = [1, 1]} : vector<16x256xf32> to vector<2x256xf32>
    %cst_23 = arith.constant dense<0.000000e+00> : vector<2x256xf32>
    %144 = tpu.matmul %142, %6, %cst_23 {dimension_numbers = #tpu.dot_dimension_numbers<[1], [0], [0], [1], [0, 0, 1, 1], [], []>} : vector<2x64xf32>, vector<64x256xf32>, vector<2x256xf32> -> vector<2x256xf32>
    %145 = arith.addf %143, %144 : vector<2x256xf32>
    %146 = vector.extract_strided_slice %145 {offsets = [0, 0], sizes = [2, 192], strides = [1, 1]} : vector<2x256xf32> to vector<2x192xf32>
    %147 = arith.negf %146 : vector<2x192xf32>
    %148 = math.exp %147 : vector<2x192xf32>
    %cst_24 = arith.constant 1.000000e+00 : f32
    %149 = vector.broadcast %cst_24 : f32 to vector<2x192xf32>
    %150 = arith.addf %149, %148 : vector<2x192xf32>
    %151 = arith.divf %149, %150 : vector<2x192xf32>
    %152 = vector.extract_strided_slice %145 {offsets = [0, 192], sizes = [2, 64], strides = [1, 1]} : vector<2x256xf32> to vector<2x64xf32>
    %153 = math.tanh %152 : vector<2x64xf32>
    %154 = vector.extract_strided_slice %151 {offsets = [0, 0], sizes = [2, 64], strides = [1, 1]} : vector<2x192xf32> to vector<2x64xf32>
    %155 = vector.extract_strided_slice %151 {offsets = [0, 64], sizes = [2, 64], strides = [1, 1]} : vector<2x192xf32> to vector<2x64xf32>
    %156 = vector.extract_strided_slice %151 {offsets = [0, 128], sizes = [2, 64], strides = [1, 1]} : vector<2x192xf32> to vector<2x64xf32>
    %157 = arith.mulf %155, %140 : vector<2x64xf32>
    %158 = arith.mulf %154, %153 : vector<2x64xf32>
    %159 = arith.addf %157, %158 : vector<2x64xf32>
    %160 = math.tanh %159 : vector<2x64xf32>
    %161 = arith.mulf %156, %160 : vector<2x64xf32>
    %162 = vector.extract_strided_slice %161 {offsets = [0, 0], sizes = [2, 32], strides = [1, 1]} : vector<2x64xf32> to vector<2x32xf32>
    %c0_25 = arith.constant 0 : index
    %c0_26 = arith.constant 0 : index
    %163 = vector.load %arg4[%c0_25, %c0_26] : memref<32x256xf32, #tpu.memory_space<vmem>>, vector<32x256xf32>
    %cst_27 = arith.constant dense<0.000000e+00> : vector<2x256xf32>
    %164 = tpu.matmul %162, %163, %cst_27 {dimension_numbers = #tpu.dot_dimension_numbers<[1], [0], [0], [1], [0, 0, 1, 1], [], []>} : vector<2x32xf32>, vector<32x256xf32>, vector<2x256xf32> -> vector<2x256xf32>
    %c0_28 = arith.constant 0 : index
    %c0_29 = arith.constant 0 : index
    %165 = vector.load %arg5[%c0_28, %c0_29] : memref<32x256xf32, #tpu.memory_space<vmem>>, vector<32x256xf32>
    %cst_30 = arith.constant dense<0.000000e+00> : vector<2x256xf32>
    %166 = tpu.matmul %28, %165, %cst_30 {dimension_numbers = #tpu.dot_dimension_numbers<[1], [0], [0], [1], [0, 0, 1, 1], [], []>} : vector<2x32xf32>, vector<32x256xf32>, vector<2x256xf32> -> vector<2x256xf32>
    %167 = arith.addf %164, %166 : vector<2x256xf32>
    %c0_31 = arith.constant 0 : index
    %c0_32 = arith.constant 0 : index
    %168 = vector.load %arg6[%c0_31, %c0_32] : memref<1x256xf32, #tpu.memory_space<vmem>>, vector<1x256xf32>
    %169 = vector.broadcast %168 : vector<1x256xf32> to vector<2x256xf32>
    %170 = arith.addf %167, %169 : vector<2x256xf32>
    %c0_33 = arith.constant 0 : index
    %c0_34 = arith.constant 0 : index
    %171 = vector.load %arg7[%c0_33, %c0_34] : memref<64x256xf32, #tpu.memory_space<vmem>>, vector<64x256xf32>
    %cst_35 = arith.constant 0.000000e+00 : f32
    %172 = vector.broadcast %cst_35 : f32 to vector<2x64xf32>
    %cst_36 = arith.constant 0.000000e+00 : f32
    %173 = vector.broadcast %cst_36 : f32 to vector<2x64xf32>
    %cst_37 = arith.constant dense<0.000000e+00> : vector<2x256xf32>
    %174 = tpu.matmul %172, %171, %cst_37 {dimension_numbers = #tpu.dot_dimension_numbers<[1], [0], [0], [1], [0, 0, 1, 1], [], []>} : vector<2x64xf32>, vector<64x256xf32>, vector<2x256xf32> -> vector<2x256xf32>
    %175 = arith.addf %170, %174 : vector<2x256xf32>
    %176 = vector.extract_strided_slice %175 {offsets = [0, 0], sizes = [2, 192], strides = [1, 1]} : vector<2x256xf32> to vector<2x192xf32>
    %177 = arith.negf %176 : vector<2x192xf32>
    %178 = math.exp %177 : vector<2x192xf32>
    %cst_38 = arith.constant 1.000000e+00 : f32
    %179 = vector.broadcast %cst_38 : f32 to vector<2x192xf32>
    %180 = arith.addf %179, %178 : vector<2x192xf32>
    %181 = arith.divf %179, %180 : vector<2x192xf32>
    %182 = vector.extract_strided_slice %175 {offsets = [0, 192], sizes = [2, 64], strides = [1, 1]} : vector<2x256xf32> to vector<2x64xf32>
    %183 = math.tanh %182 : vector<2x64xf32>
    %184 = vector.extract_strided_slice %181 {offsets = [0, 0], sizes = [2, 64], strides = [1, 1]} : vector<2x192xf32> to vector<2x64xf32>
    %185 = vector.extract_strided_slice %181 {offsets = [0, 64], sizes = [2, 64], strides = [1, 1]} : vector<2x192xf32> to vector<2x64xf32>
    %186 = vector.extract_strided_slice %181 {offsets = [0, 128], sizes = [2, 64], strides = [1, 1]} : vector<2x192xf32> to vector<2x64xf32>
    %187 = arith.mulf %185, %173 : vector<2x64xf32>
    %188 = arith.mulf %184, %183 : vector<2x64xf32>
    %189 = arith.addf %187, %188 : vector<2x64xf32>
    %190 = math.tanh %189 : vector<2x64xf32>
    %191 = arith.mulf %186, %190 : vector<2x64xf32>
    %192 = vector.extract_strided_slice %191 {offsets = [0, 0], sizes = [2, 32], strides = [1, 1]} : vector<2x64xf32> to vector<2x32xf32>
    %c0_39 = arith.constant 0 : index
    %c0_40 = arith.constant 0 : index
    %193 = vector.load %arg12[%c0_39, %c0_40] : memref<16x32xf32, #tpu.memory_space<vmem>>, vector<2x32xf32>
    tpu.vector_store %arg12[%c0_39, %c0_40], %192 {strides = array<i32>} : memref<16x32xf32, #tpu.memory_space<vmem>>, vector<2x32xf32>,
    %194 = vector.extract_strided_slice %191 {offsets = [0, 32], sizes = [2, 32], strides = [1, 1]} : vector<2x64xf32> to vector<2x32xf32>
    %c14 = arith.constant 14 : index
    %c0_41 = arith.constant 0 : index
    %195 = vector.load %arg13[%c14, %c0_41] : memref<16x32xf32, #tpu.memory_space<vmem>>, vector<2x32xf32>
    tpu.vector_store %arg13[%c14, %c0_41], %194 {strides = array<i32>} : memref<16x32xf32, #tpu.memory_space<vmem>>, vector<2x32xf32>,
    %cst_42 = arith.constant dense<0.000000e+00> : vector<2x256xf32>
    %196 = tpu.matmul %191, %171, %cst_42 {dimension_numbers = #tpu.dot_dimension_numbers<[1], [0], [0], [1], [0, 0, 1, 1], [], []>} : vector<2x64xf32>, vector<64x256xf32>, vector<2x256xf32> -> vector<2x256xf32>
    %197 = arith.addf %170, %196 : vector<2x256xf32>
    %198 = vector.extract_strided_slice %197 {offsets = [0, 0], sizes = [2, 192], strides = [1, 1]} : vector<2x256xf32> to vector<2x192xf32>
    %199 = arith.negf %198 : vector<2x192xf32>
    %200 = math.exp %199 : vector<2x192xf32>
    %cst_43 = arith.constant 1.000000e+00 : f32
    %201 = vector.broadcast %cst_43 : f32 to vector<2x192xf32>
    %202 = arith.addf %201, %200 : vector<2x192xf32>
    %203 = arith.divf %201, %202 : vector<2x192xf32>
    %204 = vector.extract_strided_slice %197 {offsets = [0, 192], sizes = [2, 64], strides = [1, 1]} : vector<2x256xf32> to vector<2x64xf32>
    %205 = math.tanh %204 : vector<2x64xf32>
    %206 = vector.extract_strided_slice %203 {offsets = [0, 0], sizes = [2, 64], strides = [1, 1]} : vector<2x192xf32> to vector<2x64xf32>
    %207 = vector.extract_strided_slice %203 {offsets = [0, 64], sizes = [2, 64], strides = [1, 1]} : vector<2x192xf32> to vector<2x64xf32>
    %208 = vector.extract_strided_slice %203 {offsets = [0, 128], sizes = [2, 64], strides = [1, 1]} : vector<2x192xf32> to vector<2x64xf32>
    %209 = arith.mulf %207, %189 : vector<2x64xf32>
    %210 = arith.mulf %206, %205 : vector<2x64xf32>
    %211 = arith.addf %209, %210 : vector<2x64xf32>
    %212 = math.tanh %211 : vector<2x64xf32>
    %213 = arith.mulf %208, %212 : vector<2x64xf32>
    %214 = vector.extract_strided_slice %213 {offsets = [0, 0], sizes = [2, 32], strides = [1, 1]} : vector<2x64xf32> to vector<2x32xf32>
    %c2 = arith.constant 2 : index
    %c0_44 = arith.constant 0 : index
    %215 = vector.load %arg12[%c2, %c0_44] : memref<16x32xf32, #tpu.memory_space<vmem>>, vector<2x32xf32>
    tpu.vector_store %arg12[%c2, %c0_44], %214 {strides = array<i32>} : memref<16x32xf32, #tpu.memory_space<vmem>>, vector<2x32xf32>,
    %216 = vector.extract_strided_slice %213 {offsets = [0, 32], sizes = [2, 32], strides = [1, 1]} : vector<2x64xf32> to vector<2x32xf32>
    %c12 = arith.constant 12 : index
    %c0_45 = arith.constant 0 : index
    %217 = vector.load %arg13[%c12, %c0_45] : memref<16x32xf32, #tpu.memory_space<vmem>>, vector<2x32xf32>
    tpu.vector_store %arg13[%c12, %c0_45], %216 {strides = array<i32>} : memref<16x32xf32, #tpu.memory_space<vmem>>, vector<2x32xf32>,
    %cst_46 = arith.constant dense<0.000000e+00> : vector<2x256xf32>
    %218 = tpu.matmul %213, %171, %cst_46 {dimension_numbers = #tpu.dot_dimension_numbers<[1], [0], [0], [1], [0, 0, 1, 1], [], []>} : vector<2x64xf32>, vector<64x256xf32>, vector<2x256xf32> -> vector<2x256xf32>
    %219 = arith.addf %170, %218 : vector<2x256xf32>
    %220 = vector.extract_strided_slice %219 {offsets = [0, 0], sizes = [2, 192], strides = [1, 1]} : vector<2x256xf32> to vector<2x192xf32>
    %221 = arith.negf %220 : vector<2x192xf32>
    %222 = math.exp %221 : vector<2x192xf32>
    %cst_47 = arith.constant 1.000000e+00 : f32
    %223 = vector.broadcast %cst_47 : f32 to vector<2x192xf32>
    %224 = arith.addf %223, %222 : vector<2x192xf32>
    %225 = arith.divf %223, %224 : vector<2x192xf32>
    %226 = vector.extract_strided_slice %219 {offsets = [0, 192], sizes = [2, 64], strides = [1, 1]} : vector<2x256xf32> to vector<2x64xf32>
    %227 = math.tanh %226 : vector<2x64xf32>
    %228 = vector.extract_strided_slice %225 {offsets = [0, 0], sizes = [2, 64], strides = [1, 1]} : vector<2x192xf32> to vector<2x64xf32>
    %229 = vector.extract_strided_slice %225 {offsets = [0, 64], sizes = [2, 64], strides = [1, 1]} : vector<2x192xf32> to vector<2x64xf32>
    %230 = vector.extract_strided_slice %225 {offsets = [0, 128], sizes = [2, 64], strides = [1, 1]} : vector<2x192xf32> to vector<2x64xf32>
    %231 = arith.mulf %229, %211 : vector<2x64xf32>
    %232 = arith.mulf %228, %227 : vector<2x64xf32>
    %233 = arith.addf %231, %232 : vector<2x64xf32>
    %234 = math.tanh %233 : vector<2x64xf32>
    %235 = arith.mulf %230, %234 : vector<2x64xf32>
    %236 = vector.extract_strided_slice %235 {offsets = [0, 0], sizes = [2, 32], strides = [1, 1]} : vector<2x64xf32> to vector<2x32xf32>
    %c4 = arith.constant 4 : index
    %c0_48 = arith.constant 0 : index
    %237 = vector.load %arg12[%c4, %c0_48] : memref<16x32xf32, #tpu.memory_space<vmem>>, vector<2x32xf32>
    tpu.vector_store %arg12[%c4, %c0_48], %236 {strides = array<i32>} : memref<16x32xf32, #tpu.memory_space<vmem>>, vector<2x32xf32>,
    %238 = vector.extract_strided_slice %235 {offsets = [0, 32], sizes = [2, 32], strides = [1, 1]} : vector<2x64xf32> to vector<2x32xf32>
    %c10 = arith.constant 10 : index
    %c0_49 = arith.constant 0 : index
    %239 = vector.load %arg13[%c10, %c0_49] : memref<16x32xf32, #tpu.memory_space<vmem>>, vector<2x32xf32>
    tpu.vector_store %arg13[%c10, %c0_49], %238 {strides = array<i32>} : memref<16x32xf32, #tpu.memory_space<vmem>>, vector<2x32xf32>,
    %cst_50 = arith.constant dense<0.000000e+00> : vector<2x256xf32>
    %240 = tpu.matmul %235, %171, %cst_50 {dimension_numbers = #tpu.dot_dimension_numbers<[1], [0], [0], [1], [0, 0, 1, 1], [], []>} : vector<2x64xf32>, vector<64x256xf32>, vector<2x256xf32> -> vector<2x256xf32>
    %241 = arith.addf %170, %240 : vector<2x256xf32>
    %242 = vector.extract_strided_slice %241 {offsets = [0, 0], sizes = [2, 192], strides = [1, 1]} : vector<2x256xf32> to vector<2x192xf32>
    %243 = arith.negf %242 : vector<2x192xf32>
    %244 = math.exp %243 : vector<2x192xf32>
    %cst_51 = arith.constant 1.000000e+00 : f32
    %245 = vector.broadcast %cst_51 : f32 to vector<2x192xf32>
    %246 = arith.addf %245, %244 : vector<2x192xf32>
    %247 = arith.divf %245, %246 : vector<2x192xf32>
    %248 = vector.extract_strided_slice %241 {offsets = [0, 192], sizes = [2, 64], strides = [1, 1]} : vector<2x256xf32> to vector<2x64xf32>
    %249 = math.tanh %248 : vector<2x64xf32>
    %250 = vector.extract_strided_slice %247 {offsets = [0, 0], sizes = [2, 64], strides = [1, 1]} : vector<2x192xf32> to vector<2x64xf32>
    %251 = vector.extract_strided_slice %247 {offsets = [0, 64], sizes = [2, 64], strides = [1, 1]} : vector<2x192xf32> to vector<2x64xf32>
    %252 = vector.extract_strided_slice %247 {offsets = [0, 128], sizes = [2, 64], strides = [1, 1]} : vector<2x192xf32> to vector<2x64xf32>
    %253 = arith.mulf %251, %233 : vector<2x64xf32>
    %254 = arith.mulf %250, %249 : vector<2x64xf32>
    %255 = arith.addf %253, %254 : vector<2x64xf32>
    %256 = math.tanh %255 : vector<2x64xf32>
    %257 = arith.mulf %252, %256 : vector<2x64xf32>
    %258 = vector.extract_strided_slice %257 {offsets = [0, 0], sizes = [2, 32], strides = [1, 1]} : vector<2x64xf32> to vector<2x32xf32>
    %c6 = arith.constant 6 : index
    %c0_52 = arith.constant 0 : index
    %259 = vector.load %arg12[%c6, %c0_52] : memref<16x32xf32, #tpu.memory_space<vmem>>, vector<2x32xf32>
    tpu.vector_store %arg12[%c6, %c0_52], %258 {strides = array<i32>} : memref<16x32xf32, #tpu.memory_space<vmem>>, vector<2x32xf32>,
    %260 = vector.extract_strided_slice %257 {offsets = [0, 32], sizes = [2, 32], strides = [1, 1]} : vector<2x64xf32> to vector<2x32xf32>
    %c8 = arith.constant 8 : index
    %c0_53 = arith.constant 0 : index
    %261 = vector.load %arg13[%c8, %c0_53] : memref<16x32xf32, #tpu.memory_space<vmem>>, vector<2x32xf32>
    tpu.vector_store %arg13[%c8, %c0_53], %260 {strides = array<i32>} : memref<16x32xf32, #tpu.memory_space<vmem>>, vector<2x32xf32>,
    %cst_54 = arith.constant dense<0.000000e+00> : vector<2x256xf32>
    %262 = tpu.matmul %257, %171, %cst_54 {dimension_numbers = #tpu.dot_dimension_numbers<[1], [0], [0], [1], [0, 0, 1, 1], [], []>} : vector<2x64xf32>, vector<64x256xf32>, vector<2x256xf32> -> vector<2x256xf32>
    %263 = arith.addf %170, %262 : vector<2x256xf32>
    %264 = vector.extract_strided_slice %263 {offsets = [0, 0], sizes = [2, 192], strides = [1, 1]} : vector<2x256xf32> to vector<2x192xf32>
    %265 = arith.negf %264 : vector<2x192xf32>
    %266 = math.exp %265 : vector<2x192xf32>
    %cst_55 = arith.constant 1.000000e+00 : f32
    %267 = vector.broadcast %cst_55 : f32 to vector<2x192xf32>
    %268 = arith.addf %267, %266 : vector<2x192xf32>
    %269 = arith.divf %267, %268 : vector<2x192xf32>
    %270 = vector.extract_strided_slice %263 {offsets = [0, 192], sizes = [2, 64], strides = [1, 1]} : vector<2x256xf32> to vector<2x64xf32>
    %271 = math.tanh %270 : vector<2x64xf32>
    %272 = vector.extract_strided_slice %269 {offsets = [0, 0], sizes = [2, 64], strides = [1, 1]} : vector<2x192xf32> to vector<2x64xf32>
    %273 = vector.extract_strided_slice %269 {offsets = [0, 64], sizes = [2, 64], strides = [1, 1]} : vector<2x192xf32> to vector<2x64xf32>
    %274 = vector.extract_strided_slice %269 {offsets = [0, 128], sizes = [2, 64], strides = [1, 1]} : vector<2x192xf32> to vector<2x64xf32>
    %275 = arith.mulf %273, %255 : vector<2x64xf32>
    %276 = arith.mulf %272, %271 : vector<2x64xf32>
    %277 = arith.addf %275, %276 : vector<2x64xf32>
    %278 = math.tanh %277 : vector<2x64xf32>
    %279 = arith.mulf %274, %278 : vector<2x64xf32>
    %280 = vector.extract_strided_slice %279 {offsets = [0, 0], sizes = [2, 32], strides = [1, 1]} : vector<2x64xf32> to vector<2x32xf32>
    %c8_56 = arith.constant 8 : index
    %c0_57 = arith.constant 0 : index
    %281 = vector.load %arg12[%c8_56, %c0_57] : memref<16x32xf32, #tpu.memory_space<vmem>>, vector<2x32xf32>
    tpu.vector_store %arg12[%c8_56, %c0_57], %280 {strides = array<i32>} : memref<16x32xf32, #tpu.memory_space<vmem>>, vector<2x32xf32>,
    %282 = vector.extract_strided_slice %279 {offsets = [0, 32], sizes = [2, 32], strides = [1, 1]} : vector<2x64xf32> to vector<2x32xf32>
    %c6_58 = arith.constant 6 : index
    %c0_59 = arith.constant 0 : index
    %283 = vector.load %arg13[%c6_58, %c0_59] : memref<16x32xf32, #tpu.memory_space<vmem>>, vector<2x32xf32>
    tpu.vector_store %arg13[%c6_58, %c0_59], %282 {strides = array<i32>} : memref<16x32xf32, #tpu.memory_space<vmem>>, vector<2x32xf32>,
    %cst_60 = arith.constant dense<0.000000e+00> : vector<2x256xf32>
    %284 = tpu.matmul %279, %171, %cst_60 {dimension_numbers = #tpu.dot_dimension_numbers<[1], [0], [0], [1], [0, 0, 1, 1], [], []>} : vector<2x64xf32>, vector<64x256xf32>, vector<2x256xf32> -> vector<2x256xf32>
    %285 = arith.addf %170, %284 : vector<2x256xf32>
    %286 = vector.extract_strided_slice %285 {offsets = [0, 0], sizes = [2, 192], strides = [1, 1]} : vector<2x256xf32> to vector<2x192xf32>
    %287 = arith.negf %286 : vector<2x192xf32>
    %288 = math.exp %287 : vector<2x192xf32>
    %cst_61 = arith.constant 1.000000e+00 : f32
    %289 = vector.broadcast %cst_61 : f32 to vector<2x192xf32>
    %290 = arith.addf %289, %288 : vector<2x192xf32>
    %291 = arith.divf %289, %290 : vector<2x192xf32>
    %292 = vector.extract_strided_slice %285 {offsets = [0, 192], sizes = [2, 64], strides = [1, 1]} : vector<2x256xf32> to vector<2x64xf32>
    %293 = math.tanh %292 : vector<2x64xf32>
    %294 = vector.extract_strided_slice %291 {offsets = [0, 0], sizes = [2, 64], strides = [1, 1]} : vector<2x192xf32> to vector<2x64xf32>
    %295 = vector.extract_strided_slice %291 {offsets = [0, 64], sizes = [2, 64], strides = [1, 1]} : vector<2x192xf32> to vector<2x64xf32>
    %296 = vector.extract_strided_slice %291 {offsets = [0, 128], sizes = [2, 64], strides = [1, 1]} : vector<2x192xf32> to vector<2x64xf32>
    %297 = arith.mulf %295, %277 : vector<2x64xf32>
    %298 = arith.mulf %294, %293 : vector<2x64xf32>
    %299 = arith.addf %297, %298 : vector<2x64xf32>
    %300 = math.tanh %299 : vector<2x64xf32>
    %301 = arith.mulf %296, %300 : vector<2x64xf32>
    %302 = vector.extract_strided_slice %301 {offsets = [0, 0], sizes = [2, 32], strides = [1, 1]} : vector<2x64xf32> to vector<2x32xf32>
    %c10_62 = arith.constant 10 : index
    %c0_63 = arith.constant 0 : index
    %303 = vector.load %arg12[%c10_62, %c0_63] : memref<16x32xf32, #tpu.memory_space<vmem>>, vector<2x32xf32>
    tpu.vector_store %arg12[%c10_62, %c0_63], %302 {strides = array<i32>} : memref<16x32xf32, #tpu.memory_space<vmem>>, vector<2x32xf32>,
    %304 = vector.extract_strided_slice %301 {offsets = [0, 32], sizes = [2, 32], strides = [1, 1]} : vector<2x64xf32> to vector<2x32xf32>
    %c4_64 = arith.constant 4 : index
    %c0_65 = arith.constant 0 : index
    %305 = vector.load %arg13[%c4_64, %c0_65] : memref<16x32xf32, #tpu.memory_space<vmem>>, vector<2x32xf32>
    tpu.vector_store %arg13[%c4_64, %c0_65], %304 {strides = array<i32>} : memref<16x32xf32, #tpu.memory_space<vmem>>, vector<2x32xf32>,
    %cst_66 = arith.constant dense<0.000000e+00> : vector<2x256xf32>
    %306 = tpu.matmul %301, %171, %cst_66 {dimension_numbers = #tpu.dot_dimension_numbers<[1], [0], [0], [1], [0, 0, 1, 1], [], []>} : vector<2x64xf32>, vector<64x256xf32>, vector<2x256xf32> -> vector<2x256xf32>
    %307 = arith.addf %170, %306 : vector<2x256xf32>
    %308 = vector.extract_strided_slice %307 {offsets = [0, 0], sizes = [2, 192], strides = [1, 1]} : vector<2x256xf32> to vector<2x192xf32>
    %309 = arith.negf %308 : vector<2x192xf32>
    %310 = math.exp %309 : vector<2x192xf32>
    %cst_67 = arith.constant 1.000000e+00 : f32
    %311 = vector.broadcast %cst_67 : f32 to vector<2x192xf32>
    %312 = arith.addf %311, %310 : vector<2x192xf32>
    %313 = arith.divf %311, %312 : vector<2x192xf32>
    %314 = vector.extract_strided_slice %307 {offsets = [0, 192], sizes = [2, 64], strides = [1, 1]} : vector<2x256xf32> to vector<2x64xf32>
    %315 = math.tanh %314 : vector<2x64xf32>
    %316 = vector.extract_strided_slice %313 {offsets = [0, 0], sizes = [2, 64], strides = [1, 1]} : vector<2x192xf32> to vector<2x64xf32>
    %317 = vector.extract_strided_slice %313 {offsets = [0, 64], sizes = [2, 64], strides = [1, 1]} : vector<2x192xf32> to vector<2x64xf32>
    %318 = vector.extract_strided_slice %313 {offsets = [0, 128], sizes = [2, 64], strides = [1, 1]} : vector<2x192xf32> to vector<2x64xf32>
    %319 = arith.mulf %317, %299 : vector<2x64xf32>
    %320 = arith.mulf %316, %315 : vector<2x64xf32>
    %321 = arith.addf %319, %320 : vector<2x64xf32>
    %322 = math.tanh %321 : vector<2x64xf32>
    %323 = arith.mulf %318, %322 : vector<2x64xf32>
    %324 = vector.extract_strided_slice %323 {offsets = [0, 0], sizes = [2, 32], strides = [1, 1]} : vector<2x64xf32> to vector<2x32xf32>
    %c12_68 = arith.constant 12 : index
    %c0_69 = arith.constant 0 : index
    %325 = vector.load %arg12[%c12_68, %c0_69] : memref<16x32xf32, #tpu.memory_space<vmem>>, vector<2x32xf32>
    tpu.vector_store %arg12[%c12_68, %c0_69], %324 {strides = array<i32>} : memref<16x32xf32, #tpu.memory_space<vmem>>, vector<2x32xf32>,
    %326 = vector.extract_strided_slice %323 {offsets = [0, 32], sizes = [2, 32], strides = [1, 1]} : vector<2x64xf32> to vector<2x32xf32>
    %c2_70 = arith.constant 2 : index
    %c0_71 = arith.constant 0 : index
    %327 = vector.load %arg13[%c2_70, %c0_71] : memref<16x32xf32, #tpu.memory_space<vmem>>, vector<2x32xf32>
    tpu.vector_store %arg13[%c2_70, %c0_71], %326 {strides = array<i32>} : memref<16x32xf32, #tpu.memory_space<vmem>>, vector<2x32xf32>,
    %cst_72 = arith.constant dense<0.000000e+00> : vector<2x256xf32>
    %328 = tpu.matmul %323, %171, %cst_72 {dimension_numbers = #tpu.dot_dimension_numbers<[1], [0], [0], [1], [0, 0, 1, 1], [], []>} : vector<2x64xf32>, vector<64x256xf32>, vector<2x256xf32> -> vector<2x256xf32>
    %329 = arith.addf %170, %328 : vector<2x256xf32>
    %330 = vector.extract_strided_slice %329 {offsets = [0, 0], sizes = [2, 192], strides = [1, 1]} : vector<2x256xf32> to vector<2x192xf32>
    %331 = arith.negf %330 : vector<2x192xf32>
    %332 = math.exp %331 : vector<2x192xf32>
    %cst_73 = arith.constant 1.000000e+00 : f32
    %333 = vector.broadcast %cst_73 : f32 to vector<2x192xf32>
    %334 = arith.addf %333, %332 : vector<2x192xf32>
    %335 = arith.divf %333, %334 : vector<2x192xf32>
    %336 = vector.extract_strided_slice %329 {offsets = [0, 192], sizes = [2, 64], strides = [1, 1]} : vector<2x256xf32> to vector<2x64xf32>
    %337 = math.tanh %336 : vector<2x64xf32>
    %338 = vector.extract_strided_slice %335 {offsets = [0, 0], sizes = [2, 64], strides = [1, 1]} : vector<2x192xf32> to vector<2x64xf32>
    %339 = vector.extract_strided_slice %335 {offsets = [0, 64], sizes = [2, 64], strides = [1, 1]} : vector<2x192xf32> to vector<2x64xf32>
    %340 = vector.extract_strided_slice %335 {offsets = [0, 128], sizes = [2, 64], strides = [1, 1]} : vector<2x192xf32> to vector<2x64xf32>
    %341 = arith.mulf %339, %321 : vector<2x64xf32>
    %342 = arith.mulf %338, %337 : vector<2x64xf32>
    %343 = arith.addf %341, %342 : vector<2x64xf32>
    %344 = math.tanh %343 : vector<2x64xf32>
    %345 = arith.mulf %340, %344 : vector<2x64xf32>
    %346 = vector.extract_strided_slice %345 {offsets = [0, 0], sizes = [2, 32], strides = [1, 1]} : vector<2x64xf32> to vector<2x32xf32>
    %c14_74 = arith.constant 14 : index
    %c0_75 = arith.constant 0 : index
    %347 = vector.load %arg12[%c14_74, %c0_75] : memref<16x32xf32, #tpu.memory_space<vmem>>, vector<2x32xf32>
    tpu.vector_store %arg12[%c14_74, %c0_75], %346 {strides = array<i32>} : memref<16x32xf32, #tpu.memory_space<vmem>>, vector<2x32xf32>,
    %348 = vector.extract_strided_slice %345 {offsets = [0, 32], sizes = [2, 32], strides = [1, 1]} : vector<2x64xf32> to vector<2x32xf32>
    %c0_76 = arith.constant 0 : index
    %c0_77 = arith.constant 0 : index
    %349 = vector.load %arg13[%c0_76, %c0_77] : memref<16x32xf32, #tpu.memory_space<vmem>>, vector<2x32xf32>
    tpu.vector_store %arg13[%c0_76, %c0_77], %348 {strides = array<i32>} : memref<16x32xf32, #tpu.memory_space<vmem>>, vector<2x32xf32>,
    %c0_78 = arith.constant 0 : index
    %c0_79 = arith.constant 0 : index
    %350 = vector.load %arg12[%c0_78, %c0_79] : memref<16x32xf32, #tpu.memory_space<vmem>>, vector<16x32xf32>
    %c0_80 = arith.constant 0 : index
    %c0_81 = arith.constant 0 : index
    %351 = vector.load %arg8[%c0_80, %c0_81] : memref<32x128xf32, #tpu.memory_space<vmem>>, vector<32x128xf32>
    %cst_82 = arith.constant dense<0.000000e+00> : vector<16x128xf32>
    %352 = tpu.matmul %350, %351, %cst_82 {dimension_numbers = #tpu.dot_dimension_numbers<[1], [0], [0], [1], [0, 0, 1, 1], [], []>} : vector<16x32xf32>, vector<32x128xf32>, vector<16x128xf32> -> vector<16x128xf32>
    %c0_83 = arith.constant 0 : index
    %c0_84 = arith.constant 0 : index
    %353 = vector.load %arg13[%c0_83, %c0_84] : memref<16x32xf32, #tpu.memory_space<vmem>>, vector<16x32xf32>
    %c0_85 = arith.constant 0 : index
    %c0_86 = arith.constant 0 : index
    %354 = vector.load %arg9[%c0_85, %c0_86] : memref<32x128xf32, #tpu.memory_space<vmem>>, vector<32x128xf32>
    %cst_87 = arith.constant dense<0.000000e+00> : vector<16x128xf32>
    %355 = tpu.matmul %353, %354, %cst_87 {dimension_numbers = #tpu.dot_dimension_numbers<[1], [0], [0], [1], [0, 0, 1, 1], [], []>} : vector<16x32xf32>, vector<32x128xf32>, vector<16x128xf32> -> vector<16x128xf32>
    %356 = arith.addf %352, %355 : vector<16x128xf32>
    %c0_88 = arith.constant 0 : index
    %c0_89 = arith.constant 0 : index
    %357 = vector.load %arg10[%c0_88, %c0_89] : memref<1x128xf32, #tpu.memory_space<vmem>>, vector<1x128xf32>
    %358 = vector.broadcast %357 : vector<1x128xf32> to vector<16x128xf32>
    %359 = arith.addf %356, %358 : vector<16x128xf32>
    %c0_90 = arith.constant 0 : index
    %c0_91 = arith.constant 0 : index
    %360 = vector.load %arg11[%c0_90, %c0_91] : memref<16x128xf32, #tpu.memory_space<vmem>>, vector<16x128xf32>
    tpu.vector_store %arg11[%c0_90, %c0_91], %359 {strides = array<i32>} : memref<16x128xf32, #tpu.memory_space<vmem>>, vector<16x128xf32>,
    return
  }
}

</mosaic_0001>

<bundles_post_ra>
// kernel: tpu_custom_call.1
= control target key start
LH: loop header
LB: loop body
LE: loop exit
PB: predicated region body
PF: predicated region fallthrough
CT: control target
= control target key end

     0   :  { %16 = vsyncpa [#allocation5], 0  ;;  %s3942_s0 = inlined_call_operand.hbm [shape: f32[16,128], index: 0, kind: input, shape index: {}]   ;;  %s3943_s1 = inlined_call_operand.hbm [shape: f32[128,256], index: 1, kind: input, shape index: {}]   ;;  %s3944_s2 = inlined_call_operand.vmem [shape: f32[1,256], index: 2, kind: input, shape index: {}]   ;;  %s3945_s3 = inlined_call_operand.hbm [shape: f32[64,256], index: 3, kind: input, shape index: {}]   ;;  %s3946_s4 = inlined_call_operand.hbm [shape: f32[32,256], index: 4, kind: input, shape index: {}]   ;;  %s3947_s5 = inlined_call_operand.hbm [shape: f32[32,256], index: 5, kind: input, shape index: {}]   ;;  %s3948_s6 = inlined_call_operand.hbm [shape: f32[1,256], index: 6, kind: input, shape index: {}]   ;;  %s3949_s7 = inlined_call_operand.hbm [shape: f32[64,256], index: 7, kind: input, shape index: {}]   ;;  %s3950_s8 = inlined_call_operand.hbm [shape: f32[32,128], index: 8, kind: input, shape index: {}]   ;;  %s3951_s9 = inlined_call_operand.vmem [shape: f32[32,128], index: 9, kind: input, shape index: {}]   ;;  %s3952_s10 = inlined_call_operand.vmem [shape: f32[1,128], index: 10, kind: input, shape index: {}]   ;;  %s3953_s11 = inlined_call_operand.hbm [shape: f32[16,128], index: 11, kind: output, shape index: {}]  }
   0x1   :  { %17 = vsyncpa [#allocation8], 0 }
   0x2   :  { %18 = vsyncpa [#allocation11], 0 }
   0x3   :  { %19 = vsyncpa [#allocation14], 0 }
   0x4   :  { %20 = vsyncpa [#allocation17], 0 }
   0x5   :  { %21 = vsyncpa [#allocation6], 0  ;;  %s3315_s17 = smov [#allocation7]   ;;  %s3105_s21 = scalar_lea.hbm %s3943_s1, 4096 }
   0x6   :  { %s39_s18 = sshll.u32 %s3315_s17, 4  ;;  %p3106_p0 = scmp.ne.s32.totalorder %s3943_s1, %s3105_s21  ;;  %s40_s18 = int_to_ptr.vmem [resolvable:$true] %s39_s18 }
   0x7   :  { %p3109_p1 = scmp.lt.u32.totalorder %s3105_s21, %s3943_s1 }
   0x9   :  { %p3111_p2 = pnand %p3109_p1, %p3106_p0 }
   0xb   :  { %3114 = shalt.err (!%p3111_p2)
}
   0xc   :  { %s3115_s26 = scalar_lea.vmem %s40_s18, 4096  ;;  %p3120_p4 = scmp.lt.s32.totalorder %s40_s18, %s40_s18 }
   0xd   :  { %p3116_p3 = scmp.ne.s32.totalorder %s40_s18, %s3115_s26  ;;  %p3121_p5 = scmp.lt.s32.totalorder %s3115_s26, %s3115_s26 }
   0xf   :  { %p3122_p6 = por %p3121_p5, %p3120_p4 }
  0x11   :  { %p3123_p7 = pnand %p3122_p6, %p3116_p3 }
  0x13   :  { %3126 = shalt.err (!%p3123_p7)
}
  0x14   :  { %s3316_s27 = smov 256   ;;  %s3317_s28 = smov 16  }
  0x15   :  { %45 = dma.hbm_to_vmem [thread:$0]  %s3943_s1, 4096, %s40_s18, [#allocation8], %s3316_s27, %s3316_s27, %s3317_s28  }
  0x16   :  { %s3318_s12 = smov [#allocation10]   ;;  %s3319_s14 = smov [#allocation13]  }
  0x17   :  { %s65_s13 = sshll.u32 %s3318_s12, 4  ;;  %s90_s15 = sshll.u32 %s3319_s14, 4  ;;  %s66_s13 = int_to_ptr.vmem [resolvable:$true] %s65_s13  ;;  %s91_s15 = int_to_ptr.vmem [resolvable:$true] %s90_s15 }
  0x18   :  { %s3127_s19 = scalar_lea.hbm %s3946_s4, 1024 }
  0x19   :  { %p3128_p8 = scmp.ne.s32.totalorder %s3946_s4, %s3127_s19  ;;  %p3131_p9 = scmp.lt.u32.totalorder %s3127_s19, %s3946_s4 }
  0x1b   :  { %p3133_p10 = pnand %p3131_p9, %p3128_p8 }
  0x1d   :  { %3136 = shalt.err (!%p3133_p10)
}
  0x1e   :  { %s3137_s1 = scalar_lea.vmem %s66_s13, 1024  ;;  %p3142_p12 = scmp.lt.s32.totalorder %s66_s13, %s66_s13 }
  0x1f   :  { %p3138_p11 = scmp.ne.s32.totalorder %s66_s13, %s3137_s1  ;;  %p3143_p13 = scmp.lt.s32.totalorder %s3137_s1, %s3137_s1 }
  0x21   :  { %p3144_p0 = por %p3143_p13, %p3142_p12 }
  0x23   :  { %p3145_p1 = pnand %p3144_p0, %p3138_p11 }
  0x25   :  { %3148 = shalt.err (!%p3145_p1)
}
  0x26   :  { %71 = dma.hbm_to_vmem [thread:$0]  %s3946_s4, 1024, %s66_s13, [#allocation11], %s3316_s27, %s3316_s27, %s3317_s28  }
  0x27   :  { %s3149_s29 = scalar_lea.hbm %s3948_s6, 32 }
  0x28   :  { %p3150_p2 = scmp.ne.s32.totalorder %s3948_s6, %s3149_s29  ;;  %p3153_p3 = scmp.lt.u32.totalorder %s3149_s29, %s3948_s6 }
  0x2a   :  { %p3155_p4 = pnand %p3153_p3, %p3150_p2 }
  0x2c   :  { %3158 = shalt.err (!%p3155_p4)
}
  0x2d   :  { %s3159_s17 = scalar_lea.vmem %s91_s15, 32  ;;  %p3164_p6 = scmp.lt.s32.totalorder %s91_s15, %s91_s15 }
  0x2e   :  { %p3160_p5 = scmp.ne.s32.totalorder %s91_s15, %s3159_s17  ;;  %p3165_p7 = scmp.lt.s32.totalorder %s3159_s17, %s3159_s17 }
  0x30   :  { %p3166_p8 = por %p3165_p7, %p3164_p6 }
  0x32   :  { %p3167_p9 = pnand %p3166_p8, %p3160_p5 }
  0x34   :  { %3170 = shalt.err (!%p3167_p9)
}
  0x35   :  { %93 = dma.hbm_to_vmem [thread:$0]  %s3948_s6, 32, %s91_s15, [#allocation14]  }
  0x36   :  { %s3320_s19 = smov [#allocation4]   ;;  %s3171_s23 = scalar_lea.hbm %s3942_s0, 256 }
  0x37   :  { %s27_s20 = sshll.u32 %s3320_s19, 4  ;;  %p3172_p10 = scmp.ne.s32.totalorder %s3942_s0, %s3171_s23  ;;  %s28_s20 = int_to_ptr.vmem [resolvable:$true] %s27_s20 }
  0x38   :  { %p3175_p11 = scmp.lt.u32.totalorder %s3171_s23, %s3942_s0 }
  0x3a   :  { %p3177_p12 = pnand %p3175_p11, %p3172_p10 }
  0x3c   :  { %3180 = shalt.err (!%p3177_p12)
}
  0x3d   :  { %s3181_s26 = scalar_lea.vmem %s28_s20, 256  ;;  %p3186_p0 = scmp.lt.s32.totalorder %s28_s20, %s28_s20 }
  0x3e   :  { %p3182_p13 = scmp.ne.s32.totalorder %s28_s20, %s3181_s26  ;;  %p3187_p1 = scmp.lt.s32.totalorder %s3181_s26, %s3181_s26 }
  0x40   :  { %p3188_p2 = por %p3187_p1, %p3186_p0 }
  0x42   :  { %p3189_p3 = pnand %p3188_p2, %p3182_p13 }
  0x44   :  { %3192 = shalt.err (!%p3189_p3)
}
  0x45   :  { %s3321_s6 = smov 128   ;;  %s3322_s15 = smov 8  }
  0x46   :  { %33 = dma.hbm_to_vmem [thread:$0]  %s3942_s0, 256, %s28_s20, [#allocation5], %s3321_s6, %s3321_s6, %s3322_s15  }
  0x47   :  { %s3323_s12 = smov [#allocation9]   ;;  %s3324_s16 = smov [#allocation12]  }
  0x48   :  { %s53_s14 = sshll.u32 %s3323_s12, 4  ;;  %s77_s17 = sshll.u32 %s3324_s16, 4  ;;  %s54_s14 = int_to_ptr.vmem [resolvable:$true] %s53_s14  ;;  %s3448_s17 = int_to_ptr.vmem [resolvable:$true] %s77_s17 }
  0x49   :  { %s3193_s19 = scalar_lea.hbm %s3945_s3, 2048 }
  0x4a   :  { %p3194_p4 = scmp.ne.s32.totalorder %s3945_s3, %s3193_s19  ;;  %p3197_p5 = scmp.lt.u32.totalorder %s3193_s19, %s3945_s3 }
  0x4c   :  { %p3199_p6 = pnand %p3197_p5, %p3194_p4 }
  0x4e   :  { %3202 = shalt.err (!%p3199_p6)
}
  0x4f   :  { %s3203_s0 = scalar_lea.vmem %s54_s14, 2048  ;;  %p3208_p8 = scmp.lt.s32.totalorder %s54_s14, %s54_s14 }
  0x50   :  { %p3204_p7 = scmp.ne.s32.totalorder %s54_s14, %s3203_s0  ;;  %p3209_p9 = scmp.lt.s32.totalorder %s3203_s0, %s3203_s0 }
  0x52   :  { %p3210_p10 = por %p3209_p9, %p3208_p8 }
  0x54   :  { %p3211_p11 = pnand %p3210_p10, %p3204_p7 }
  0x56   :  { %3214 = shalt.err (!%p3211_p11)
}
  0x57   :  { %59 = dma.hbm_to_vmem [thread:$0]  %s3945_s3, 2048, %s54_s14, [#allocation8], %s3316_s27, %s3316_s27, %s3317_s28  }
  0x58   :  { %s3215_s26 = scalar_lea.hbm %s3947_s5, 1024 }
  0x59   :  { %p3216_p12 = scmp.ne.s32.totalorder %s3947_s5, %s3215_s26  ;;  %p3219_p13 = scmp.lt.u32.totalorder %s3215_s26, %s3947_s5 }
  0x5b   :  { %p3221_p0 = pnand %p3219_p13, %p3216_p12 }
  0x5d   :  { %3224 = shalt.err (!%p3221_p0)
}
  0x5e   :  { %s3225_s4 = scalar_lea.vmem %s3448_s17, 1024  ;;  %p3230_p2 = scmp.lt.s32.totalorder %s3448_s17, %s3448_s17 }
  0x5f   :  { %p3226_p1 = scmp.ne.s32.totalorder %s3448_s17, %s3225_s4  ;;  %p3231_p3 = scmp.lt.s32.totalorder %s3225_s4, %s3225_s4 }
  0x61   :  { %p3232_p4 = por %p3231_p3, %p3230_p2 }
  0x63   :  { %p3233_p5 = pnand %p3232_p4, %p3226_p1 }
  0x65   :  { %3236 = shalt.err (!%p3233_p5)
}
  0x66   :  { %83 = dma.hbm_to_vmem [thread:$0]  %s3947_s5, 1024, %s3448_s17, [#allocation11], %s3316_s27, %s3316_s27, %s3317_s28  }
  0x67   :  { %s3325_s13 = smov [#allocation15]   ;;  %s3326_s21 = smov [#allocation16]  }
  0x68   :  { %s99_s19 = sshll.u32 %s3325_s13, 4  ;;  %s111_s22 = sshll.u32 %s3326_s21, 4  ;;  %s100_s19 = int_to_ptr.vmem [resolvable:$true] %s99_s19  ;;  %s3485_s22 = int_to_ptr.vmem [resolvable:$true] %s111_s22 }
  0x69   :  { %s3237_s0 = scalar_lea.hbm %s3949_s7, 2048 }
  0x6a   :  { %p3238_p6 = scmp.ne.s32.totalorder %s3949_s7, %s3237_s0  ;;  %p3241_p7 = scmp.lt.u32.totalorder %s3237_s0, %s3949_s7 }
  0x6c   :  { %p3243_p8 = pnand %p3241_p7, %p3238_p6 }
  0x6e   :  { %3246 = shalt.err (!%p3243_p8)
}
  0x6f   :  { %s3247_s5 = scalar_lea.vmem %s100_s19, 2048  ;;  %p3252_p10 = scmp.lt.s32.totalorder %s100_s19, %s100_s19 }
  0x70   :  { %p3248_p9 = scmp.ne.s32.totalorder %s100_s19, %s3247_s5  ;;  %p3253_p11 = scmp.lt.s32.totalorder %s3247_s5, %s3247_s5 }
  0x72   :  { %p3254_p12 = por %p3253_p11, %p3252_p10 }
  0x74   :  { %p3255_p13 = pnand %p3254_p12, %p3248_p9 }
  0x76   :  { %3258 = shalt.err (!%p3255_p13)
}
  0x77   :  { %105 = dma.hbm_to_vmem [thread:$0]  %s3949_s7, 2048, %s100_s19, [#allocation14], %s3316_s27, %s3316_s27, %s3317_s28  }
  0x78   :  { %s3259_s12 = scalar_lea.hbm %s3950_s8, 512 }
  0x79   :  { %p3260_p0 = scmp.ne.s32.totalorder %s3950_s8, %s3259_s12  ;;  %p3263_p1 = scmp.lt.u32.totalorder %s3259_s12, %s3950_s8 }
  0x7b   :  { %p3265_p2 = pnand %p3263_p1, %p3260_p0 }
  0x7d   :  { %3268 = shalt.err (!%p3265_p2)
}
  0x7e   :  { %s3269_s13 = scalar_lea.vmem %s3485_s22, 512  ;;  %p3274_p4 = scmp.lt.s32.totalorder %s3485_s22, %s3485_s22 }
  0x7f   :  { %p3270_p3 = scmp.ne.s32.totalorder %s3485_s22, %s3269_s13  ;;  %p3275_p5 = scmp.lt.s32.totalorder %s3269_s13, %s3269_s13 }
  0x81   :  { %p3276_p6 = por %p3275_p5, %p3274_p4 }
  0x83   :  { %p3277_p7 = pnand %p3276_p6, %p3270_p3 }
  0x85   :  { %3280 = shalt.err (!%p3277_p7)
}
  0x86   :  { %117 = dma.hbm_to_vmem [thread:$0]  %s3950_s8, 512, %s3485_s22, [#allocation17], %s3321_s6, %s3321_s6, %s3322_s15  }
  0x87   :  { %3303 = dma.done.wait [#allocation5], 256  }
  0x88   :  { %3304 = vsyncadd [#allocation5], 4294967040 }
  0x89   :  { %3305 = dma.done.wait [#allocation8], 6144  }
  0x8a   :  { %3306 = vsyncadd [#allocation8], 4294961152 }
  0x8b   :  { %3307 = dma.done.wait [#allocation11], 2048  }
  0x8c   :  { %3308 = vsyncadd [#allocation11], 4294965248 }
  0x8d   :  { %3309 = dma.done.wait [#allocation14], 2080  }
  0x8e   :  { %3310 = vsyncadd [#allocation14], 4294965216 }
  0x8f   :  { %3311 = dma.done.wait [#allocation17], 512  }
  0x90   :  { %3312 = vsyncadd [#allocation17], 4294966784  ;;  %v3327_v0 = vmov 0.0   ;;  %v149_v1 = vld [vmem:[#allocation7 + $0x8] sm:$0xff]  ;;  %v151_v2 = vld [vmem:[#allocation7 + $0x18] sm:$0xff]  ;;  %s3328_s19 = smov 64  }
  0x91   :  { %256 = vmatprep.mubr.f32.mxu0 %v3327_v0  ;;  %353 = vmatprep.mubr.f32.mxu1 %v3327_v0  ;;  %v148_v3 = vld [vmem:[#allocation7] sm:$0xff]  ;;  %v2573_v4 = vpack.c.bf16 %v151_v2, %v149_v1  ;;  %v150_v5 = vld [vmem:[#allocation7 + $0x10] sm:$0xff]  ;;  %v153_v6 = vld [vmem:[#allocation7 + $0x28] sm:$0xff]  ;;  %vm285_vm0 = vcmask 523264   ;;  %vm1214_vm1 = vcmask 261120   ;;  %vm1496_vm2 = vcmask 254976  }
  0x92   :  { %v155_v7 = vld [vmem:[#allocation7 + $0x38] sm:$0xff]  ;;  %v2575_v8 = vpack.c.bf16 %v150_v5, %v148_v3  ;;  %v152_v10 = vld [vmem:[#allocation7 + $0x20] sm:$0xff]  ;;  %v154_v11 = vld [vmem:[#allocation7 + $0x30] sm:$0xff]  ;;  %s3330_s5 = smov [#allocation18]  }
  0x93   :  { %v2577_v9 = vpack.c.bf16 %v155_v7, %v153_v6  ;;  %v157_v12 = vld [vmem:[#allocation7 + $0x48] sm:$0xff]  ;;  %2574 = vmatprep.subr.bf16.mxu0 %v2573_v4  ;;  %v159_v13 = vld [vmem:[#allocation7 + $0x58] sm:$0xff]  ;;  %v2579_v14 = vpack.c.bf16 %v154_v11, %v152_v10  ;;  %v156_v16 = vld [vmem:[#allocation7 + $0x40] sm:$0xff]  ;;  %v182_v11 = vlaneseq  ;;  %s2470_s17 = sshll.u32 %s3330_s5, 4  ;;  %s2471_s17 = int_to_ptr.vmem [resolvable:$true] %s2470_s17 }
  0x94   :  { %2576 = vmatpush1.bf16.msra.mxu0 %v2575_v8  ;;  %v2581_v15 = vpack.c.bf16 %v159_v13, %v157_v12  ;;  %v158_v17 = vld [vmem:[#allocation7 + $0x50] sm:$0xff]  ;;  %v161_v18 = vld [vmem:[#allocation7 + $0x68] sm:$0xff]  ;;  %v163_v19 = vld [vmem:[#allocation7 + $0x78] sm:$0xff]  ;;  %s3281_s26 = scalar_lea.vmem %s2471_s17, 256  ;;  %p3286_p9 = scmp.lt.s32.totalorder %s2471_s17, %s2471_s17 }
  0x95   :  { %2578 = vmatprep.subr.bf16.mxu0 %v2577_v9  ;;  %v270_v20 = vld [vmem:[#allocation9 + $0x8] sm:$0xff]  ;;  %v272_v21 = vld [vmem:[#allocation9 + $0x18] sm:$0xff]  ;;  %v269_v22 = vld [vmem:[#allocation9] sm:$0xff]  ;;  %v2583_v24 = vpack.c.bf16 %v158_v17, %v156_v16  ;;  %v2585_v29 = vpack.c.bf16 %v163_v19, %v161_v18  ;;  %v3569_v12 = vshrl.u32 %v182_v11, 7  ;;  %p3282_p8 = scmp.ne.s32.totalorder %s2471_s17, %s3281_s26  ;;  %p3287_p10 = scmp.lt.s32.totalorder %s3281_s26, %s3281_s26 }
  0x96   :  { %v271_v23 = vld [vmem:[#allocation9 + $0x10] sm:$0xff]  ;;  %v160_v25 = vld [vmem:[#allocation7 + $0x60] sm:$0xff]  ;;  %v3524_v27 = vpack.c.bf16 %v272_v21, %v270_v20  ;;  %v165_v30 = vld [vmem:[#allocation7 + $0x88] sm:$0xff] }
  0x97   :  { %v162_v26 = vld [vmem:[#allocation7 + $0x70] sm:$0xff]  ;;  %v3526_v28 = vpack.c.bf16 %v271_v23, %v269_v22  ;;  %v274_v31 = vld [vmem:[#allocation9 + $0x28] sm:$0xff]  ;;  %v276_v32 = vld [vmem:[#allocation9 + $0x38] sm:$0xff]  ;;  %v184_v23 = vsub.s32 0, %v3569_v12  ;;  %p3288_p11 = por %p3287_p10, %p3286_p9 }
  0x98   :  { %2580 = vmatpush1.bf16.msra.mxu0 %v2579_v14  ;;  %v167_v33 = vld [vmem:[#allocation7 + $0x98] sm:$0xff]  ;;  %2606 = vmatprep.subr.bf16.mxu1 %v3524_v27  ;;  %v3529_v34 = vpack.c.bf16 %v276_v32, %v274_v31  ;;  %v273_v35 = vld [vmem:[#allocation9 + $0x20] sm:$0xff]  ;;  %v275_v36 = vld [vmem:[#allocation9 + $0x30] sm:$0xff]  ;;  %v2587_v38 = vpack.c.bf16 %v162_v26, %v160_v25 }
  0x99   :  { %2582 = vmatprep.subr.bf16.mxu0 %v2581_v15  ;;  %2608 = vmatpush1.bf16.msra.mxu1 %v3526_v28  ;;  %v3532_v37 = vpack.c.bf16 %v275_v36, %v273_v35  ;;  %v278_v39 = vld [vmem:[#allocation9 + $0x48] sm:$0xff]  ;;  %v280_v40 = vld [vmem:[#allocation9 + $0x58] sm:$0xff]  ;;  %v277_v41 = vld [vmem:[#allocation9 + $0x40] sm:$0xff]  ;;  %v2589_v42 = vpack.c.bf16 %v167_v33, %v165_v30  ;;  %v188_v15 = vsub.s32 1, %v3569_v12  ;;  %p3289_p12 = pnand %p3288_p11, %p3282_p8 }
  0x9a   :  { %2610 = vmatprep.subr.bf16.mxu1 %v3529_v34  ;;  %v164_v43 = vld [vmem:[#allocation7 + $0x80] sm:$0xff]  ;;  %v166_v44 = vld [vmem:[#allocation7 + $0x90] sm:$0xff]  ;;  %v3535_v45 = vpack.c.bf16 %v280_v40, %v278_v39  ;;  %v169_v47 = vld [vmem:[#allocation7 + $0xa8] sm:$0xff] }
  0x9b   :  { %v279_v46 = vld [vmem:[#allocation9 + $0x50] sm:$0xff]  ;;  %v171_v48 = vld [vmem:[#allocation7 + $0xb8] sm:$0xff]  ;;  %v282_v49 = vld [vmem:[#allocation9 + $0x68] sm:$0xff]  ;;  %v2591_v52 = vpack.c.bf16 %v166_v44, %v164_v43 }
  0x9c   :  { %2584 = vmatpush1.bf16.msra.mxu0 %v2583_v24  ;;  %v3538_v50 = vpack.c.bf16 %v279_v46, %v277_v41  ;;  %v284_v51 = vld [vmem:[#allocation9 + $0x78] sm:$0xff]  ;;  %v281_v54 = vld [vmem:[#allocation9 + $0x60] sm:$0xff]  ;;  %v283_v55 = vld [vmem:[#allocation9 + $0x70] sm:$0xff]  ;;  %v2593_v56 = vpack.c.bf16 %v171_v48, %v169_v47 }
  0x9d   :  { %2586 = vmatprep.subr.bf16.mxu0 %v2585_v29  ;;  %2612 = vmatpush1.bf16.msra.mxu1 %v3532_v37  ;;  %v3541_v53 = vpack.c.bf16 %v284_v51, %v282_v49  ;;  %v168_v57 = vld [vmem:[#allocation7 + $0xa0] sm:$0xff]  ;;  %v170_v58 = vld [vmem:[#allocation7 + $0xb0] sm:$0xff]  ;;  %v173_v59 = vld [vmem:[#allocation7 + $0xc8] sm:$0xff]  ;;  %v3544_v61 = vpack.c.bf16 %v283_v55, %v281_v54 }
  0x9e   :  { %2614 = vmatprep.subr.bf16.mxu1 %v3535_v45  ;;  %v175_v60 = vld [vmem:[#allocation7 + $0xd8] sm:$0xff]  ;;  %v2595_v62 = vpack.c.bf16 %v170_v58, %v168_v57  ;;  %v172_v1 = vld [vmem:[#allocation7 + $0xc0] sm:$0xff]  ;;  %v174_v2 = vld [vmem:[#allocation7 + $0xd0] sm:$0xff] }
  0x9f   :  { %v2597_v63 = vpack.c.bf16 %v175_v60, %v173_v59  ;;  %v177_v3 = vld [vmem:[#allocation7 + $0xe8] sm:$0xff]  ;;  %v179_v4 = vld [vmem:[#allocation7 + $0xf8] sm:$0xff]  ;;  %v2599_v5 = vpack.c.bf16 %v174_v2, %v172_v1  ;;  %v176_v7 = vld [vmem:[#allocation7 + $0xe0] sm:$0xff] }
  0xa0   :  { %2588 = vmatpush1.bf16.msra.mxu0 %v2587_v38  ;;  %v2601_v6 = vpack.c.bf16 %v179_v4, %v177_v3  ;;  %v178_v8 = vld [vmem:[#allocation7 + $0xf0] sm:$0xff]  ;;  %v147_v1 = vld [vmem:[#allocation4 + $0x8] sm:$0xff] }
  0xa1   :  { %2590 = vmatprep.subr.bf16.mxu0 %v2589_v42  ;;  %2616 = vmatpush1.bf16.msra.mxu1 %v3538_v50  ;;  %v2603_v9 = vpack.c.bf16 %v178_v8, %v176_v7  ;;  %v146_v10 = vld [vmem:[#allocation4] sm:$0xff] }
  0xa2   :  { %2618 = vmatprep.subr.bf16.mxu1 %v3541_v53  ;;  %v180_v16 = vld [vmem:[%s3944_s2] sm:$0x3]  ;;  %s3329_s2 = smov 96  }
  0xa3   :  { %v3577_v17 = vrot.slane %v180_v16, %v188_v15  ;;  %v3587_v24 = vrot.slane %v180_v16, %v184_v23 }
  0xa4   :  { %2592 = vmatpush1.bf16.msra.mxu0 %v2591_v52 }
  0xa5   :  { %2594 = vmatprep.subr.bf16.mxu0 %v2593_v56  ;;  %2620 = vmatpush1.bf16.msra.mxu1 %v3544_v61 }
  0xa6   :  { %2622 = vmatprep.subr.bf16.mxu1 %v3524_v27 }
  0xa8   :  { %2596 = vmatpush1.bf16.msra.mxu0 %v2595_v62  ;;  %354 = vmatmul.mubr.f32.vlgmr.msra.gmra.mrb[0].mxu1 %v3327_v0 }
  0xa9   :  { %2598 = vmatprep.subr.bf16.mxu0 %v2597_v63  ;;  %2624 = vmatpush1.bf16.msra.mxu1 %v3526_v28 }
  0xaa   :  { %459 = vmatprep.mubr.f32.mxu1 %v3327_v0  ;;  %2626 = vmatprep.subr.bf16.mxu1 %v3529_v34 }
  0xac   :  { %2600 = vmatpush1.bf16.msra.mxu0 %v2599_v5 }
  0xad   :  { %2602 = vmatprep.subr.bf16.mxu0 %v2601_v6  ;;  %2628 = vmatpush1.bf16.msra.mxu1 %v3532_v37 }
  0xae   :  { %2630 = vmatprep.subr.bf16.mxu1 %v3535_v45 }
  0xb0   :  { %2604 = vmatpush1.bf16.msra.mxu0 %v2603_v9 }
  0xb1   :  { %2638 = vmatprep.subr.bf16.mxu0 %v3524_v27  ;;  %2632 = vmatpush1.bf16.msra.mxu1 %v3538_v50 }
  0xb2   :  { %2634 = vmatprep.subr.bf16.mxu1 %v3541_v53 }
  0xb3   :  { %257 = vmatmul.mubr.f32.vlgmr.msra.gmra.mrb[0].mxu0 %v146_v10 }
  0xb4   :  { %2640 = vmatpush1.bf16.msra.mxu0 %v3526_v28  ;;  %262 = vmatprep.mubr.f32.mxu0 %v3327_v0 }
  0xb5   :  { %2642 = vmatprep.subr.bf16.mxu0 %v3529_v34  ;;  %2636 = vmatpush1.bf16.msra.mxu1 %v3544_v61 }
  0xb6   :  { %2654 = vmatprep.subr.bf16.mxu1 %v3524_v27 }
  0xb7   :  { %263 = vmatmul.mubr.f32.gmra.mrb[2].mxu0 %v147_v1 }
  0xb8   :  { %2644 = vmatpush1.bf16.msra.mxu0 %v3532_v37  ;;  %575 = vmatprep.mubr.f32.mxu0 %v3327_v0 }
  0xb9   :  { %2646 = vmatprep.subr.bf16.mxu0 %v3535_v45 }
  0xbc   :  { %2648 = vmatpush1.bf16.msra.mxu0 %v3538_v50 }
  0xbd   :  { %2650 = vmatprep.subr.bf16.mxu0 %v3541_v53 }
  0xc0   :  { %2652 = vmatpush1.bf16.msra.mxu0 %v3544_v61 }
  0xc1   :  { %2670 = vmatprep.subr.bf16.mxu0 %v3524_v27 }
 0x17b   :  { %v355_v13 = vpop.f32.mrb[0].mxu1 }
 0x17c   :  { %v357_v14 = vpop.f32.mrb[1].mxu1 }
 0x186   :  { %v258_v18 = vpop.f32.mrb[0].mxu0 }
 0x187   :  { %v260_v19 = vpop.f32.mrb[1].mxu0  ;;  %v3590_v25 = vadd.f32 %v258_v18, %v3587_v24 }
 0x188   :  { %v3580_v20 = vadd.f32 %v260_v19, %v3577_v17 }
 0x189   :  { %v360_v26 = vadd.f32 %v355_v13, %v3590_v25 }
 0x18a   :  { %v361_v21 = vadd.f32 %v357_v14, %v3580_v20  ;;  %v3614_v8 = vpop.f32.mrb[2].mxu0 }
 0x18b   :  { %v2486_v29 = vmul.f32 -1.442695, %v360_v26  ;;  %v3616_v9 = vpop.f32.mrb[3].mxu0 }
 0x18c   :  { %2913 = vtanh.f32 %v361_v21  ;;  %v2487_v41 = vmul.f32 -1.442695, %v361_v21 }
 0x18d   :  { %2915 = vpow2.f32 %v2486_v29 }
 0x196   :  { %v2914_v22 = vpop.eup %2913 }
 0x197   :  { %377 = vrot.lane.b32.xlu0 %v2914_v22, %s3328_s19  ;;  %v2916_v30 = vpop.eup %2915 }
 0x198   :  { %v368_v31 = vadd.f32 1.0, %v2916_v30 }
 0x19a   :  { %2917 = vrcp.f32 %v368_v31 }
 0x1a4   :  { %v2918_v32 = vpop.eup %2917 }
 0x1a5   :  { %v375_v36 = vmul.f32 0.0, %v2918_v32 }
 0x209   :  { %v378_v33 = vpop.permute.xlu0 %377 }
 0x20a   :  { %v380_v35 = vmul.f32 %v2918_v32, %v378_v33 }
 0x20c   :  { %382 = vrot.lane.b32.xlu0 %v380_v35, %s3328_s19 }
 0x27e   :  { %v383_v38 = vpop.permute.xlu0 %382 }
 0x27f   :  { %v385_v39 = vadd.f32 %v383_v38, %v375_v36 }
 0x281   :  { %2919 = vtanh.f32 %v385_v39  ;;  %v488_v2 = vrot.slane %v385_v39, 6 }
 0x282   :  { %2921 = vpow2.f32 %v2487_v41 }
 0x28b   :  { %v2920_v40 = vpop.eup %2919 }
 0x28c   :  { %388 = vrot.lane.b32.xlu1 %v2920_v40, %s3328_s19  ;;  %v2922_v42 = vpop.eup %2921 }
 0x28d   :  { %v369_v43 = vadd.f32 1.0, %v2922_v42 }
 0x28f   :  { %2923 = vrcp.f32 %v369_v43 }
 0x299   :  { %v2924_v44 = vpop.eup %2923 }
 0x2fe   :  { %v389_v46 = vpop.permute.xlu1 %388 }
 0x2ff   :  { %v3595_v47 = vmul.f32 %v2924_v44, %v389_v46 }
 0x301   :  { %2488 = vmatmul.mubr.msk.f32.vlgmr.msra.gmra.mrb[2].mxu1 %vm285_vm0, %v3595_v47 }
 0x302   :  { %2656 = vmatpush1.bf16.msra.mxu1 %v3526_v28  ;;  %691 = vmatprep.mubr.f32.mxu1 %v3327_v0 }
 0x303   :  { %2658 = vmatprep.subr.bf16.mxu1 %v3529_v34 }
 0x306   :  { %2660 = vmatpush1.bf16.msra.mxu1 %v3532_v37 }
 0x307   :  { %2662 = vmatprep.subr.bf16.mxu1 %v3535_v45 }
 0x30a   :  { %2664 = vmatpush1.bf16.msra.mxu1 %v3538_v50 }
 0x30b   :  { %2666 = vmatprep.subr.bf16.mxu1 %v3541_v53 }
 0x30e   :  { %2668 = vmatpush1.bf16.msra.mxu1 %v3544_v61 }
 0x30f   :  { %2686 = vmatprep.subr.bf16.mxu1 %v3524_v27 }
 0x3d4   :  { %v461_v48 = vpop.f32.mrb[2].mxu1 }
 0x3d5   :  { %v463_v49 = vpop.f32.mrb[3].mxu1  ;;  %v468_v55 = vrot.slane %v461_v48, 6 }
 0x3d6   :  { %v469_v51 = vrot.slane %v463_v49, 6 }
 0x3d7   :  { %v472_v56 = vadd.f32 %v468_v55, %v3590_v25 }
 0x3d8   :  { %v473_v52 = vadd.f32 %v469_v51, %v3580_v20 }
 0x3d9   :  { %v2489_v57 = vmul.f32 -1.442695, %v472_v56 }
 0x3da   :  { %2925 = vtanh.f32 %v473_v52  ;;  %v2490_v7 = vmul.f32 -1.442695, %v473_v52 }
 0x3db   :  { %2927 = vpow2.f32 %v2489_v57 }
 0x3e4   :  { %v2926_v54 = vpop.eup %2925 }
 0x3e5   :  { %492 = vrot.lane.b32.xlu1 %v2926_v54, %s3328_s19  ;;  %v2928_v58 = vpop.eup %2927 }
 0x3e6   :  { %v480_v59 = vadd.f32 1.0, %v2928_v58 }
 0x3e8   :  { %2929 = vrcp.f32 %v480_v59 }
 0x3f2   :  { %v2930_v60 = vpop.eup %2929 }
 0x3f3   :  { %v490_v3 = vmul.f32 %v2930_v60, %v488_v2 }
 0x457   :  { %v493_v62 = vpop.permute.xlu1 %492 }
 0x458   :  { %v495_v63 = vmul.f32 %v2930_v60, %v493_v62 }
 0x45a   :  { %497 = vrot.lane.b32.xlu0 %v495_v63, %s3328_s19 }
 0x4cc   :  { %v498_v4 = vpop.permute.xlu0 %497 }
 0x4cd   :  { %v500_v5 = vadd.f32 %v498_v4, %v490_v3 }
 0x4cf   :  { %2931 = vtanh.f32 %v500_v5  ;;  %v604_v40 = vrot.slane %v500_v5, 6 }
 0x4d0   :  { %2933 = vpow2.f32 %v2490_v7 }
 0x4d9   :  { %v2932_v6 = vpop.eup %2931 }
 0x4da   :  { %503 = vrot.lane.b32.xlu1 %v2932_v6, %s3328_s19  ;;  %v2934_v10 = vpop.eup %2933 }
 0x4db   :  { %v481_v11 = vadd.f32 1.0, %v2934_v10 }
 0x4dd   :  { %2935 = vrcp.f32 %v481_v11 }
 0x4e7   :  { %v2936_v13 = vpop.eup %2935 }
 0x54c   :  { %v504_v14 = vpop.permute.xlu1 %503 }
 0x54d   :  { %v506_v16 = vmul.f32 %v2936_v13, %v504_v14 }
 0x54f   :  { %v508_v18 = vrot.slane %v506_v16, 2 }
 0x551   :  { %2491 = vmatmul.mubr.msk.f32.vlgmr.msra.gmra.mrb[4].mxu0 %vm285_vm0, %v508_v18 }
 0x552   :  { %2672 = vmatpush1.bf16.msra.mxu0 %v3526_v28  ;;  %807 = vmatprep.mubr.f32.mxu0 %v3327_v0 }
 0x553   :  { %2674 = vmatprep.subr.bf16.mxu0 %v3529_v34 }
 0x556   :  { %2676 = vmatpush1.bf16.msra.mxu0 %v3532_v37 }
 0x557   :  { %2678 = vmatprep.subr.bf16.mxu0 %v3535_v45 }
 0x55a   :  { %2680 = vmatpush1.bf16.msra.mxu0 %v3538_v50 }
 0x55b   :  { %2682 = vmatprep.subr.bf16.mxu0 %v3541_v53 }
 0x55e   :  { %2684 = vmatpush1.bf16.msra.mxu0 %v3544_v61 }
 0x55f   :  { %2702 = vmatprep.subr.bf16.mxu0 %v3524_v27 }
 0x624   :  { %v577_v19 = vpop.f32.mrb[4].mxu0 }
 0x625   :  { %v579_v21 = vpop.f32.mrb[5].mxu0  ;;  %v584_v30 = vrot.slane %v577_v19, 4 }
 0x626   :  { %v585_v22 = vrot.slane %v579_v21, 4 }
 0x627   :  { %v588_v31 = vadd.f32 %v584_v30, %v3590_v25 }
 0x628   :  { %v589_v26 = vadd.f32 %v585_v22, %v3580_v20  ;;  %v3659_v22 = vadd.f32 %v3616_v9, %v3577_v17 }
 0x629   :  { %v2492_v32 = vmul.f32 -1.442695, %v588_v31 }
 0x62a   :  { %2937 = vtanh.f32 %v589_v26  ;;  %v2493_v46 = vmul.f32 -1.442695, %v589_v26 }
 0x62b   :  { %2939 = vpow2.f32 %v2492_v32  ;;  %v3665_v32 = vadd.f32 %v3614_v8, %v3587_v24 }
 0x634   :  { %v2938_v29 = vpop.eup %2937 }
 0x635   :  { %608 = vrot.lane.b32.xlu0 %v2938_v29, %s3328_s19  ;;  %v2940_v33 = vpop.eup %2939 }
 0x636   :  { %v596_v35 = vadd.f32 1.0, %v2940_v33 }
 0x638   :  { %2941 = vrcp.f32 %v596_v35 }
 0x642   :  { %v2942_v36 = vpop.eup %2941 }
 0x643   :  { %v606_v41 = vmul.f32 %v2942_v36, %v604_v40 }
 0x6a7   :  { %v609_v38 = vpop.permute.xlu0 %608 }
 0x6a8   :  { %v611_v39 = vmul.f32 %v2942_v36, %v609_v38 }
 0x6aa   :  { %613 = vrot.lane.b32.xlu1 %v611_v39, %s3328_s19 }
 0x71c   :  { %v614_v42 = vpop.permute.xlu1 %613 }
 0x71d   :  { %v616_v43 = vadd.f32 %v614_v42, %v606_v41 }
 0x71f   :  { %2943 = vtanh.f32 %v616_v43  ;;  %v720_v6 = vrot.slane %v616_v43, 6 }
 0x720   :  { %2945 = vpow2.f32 %v2493_v46 }
 0x729   :  { %v2944_v44 = vpop.eup %2943 }
 0x72a   :  { %619 = vrot.lane.b32.xlu0 %v2944_v44, %s3328_s19  ;;  %v2946_v48 = vpop.eup %2945 }
 0x72b   :  { %v597_v49 = vadd.f32 1.0, %v2946_v48 }
 0x72d   :  { %2947 = vrcp.f32 %v597_v49 }
 0x737   :  { %v2948_v51 = vpop.eup %2947 }
 0x79c   :  { %v620_v52 = vpop.permute.xlu0 %619 }
 0x79d   :  { %v622_v54 = vmul.f32 %v2948_v51, %v620_v52 }
 0x79f   :  { %v624_v55 = vrot.slane %v622_v54, 4 }
 0x7a1   :  { %2494 = vmatmul.mubr.msk.f32.vlgmr.msra.gmra.mrb[4].mxu1 %vm285_vm0, %v624_v55 }
 0x7a2   :  { %2688 = vmatpush1.bf16.msra.mxu1 %v3526_v28  ;;  %916 = vmatprep.mubr.f32.mxu1 %v3327_v0 }
 0x7a3   :  { %2690 = vmatprep.subr.bf16.mxu1 %v3529_v34 }
 0x7a6   :  { %2692 = vmatpush1.bf16.msra.mxu1 %v3532_v37 }
 0x7a7   :  { %2694 = vmatprep.subr.bf16.mxu1 %v3535_v45 }
 0x7aa   :  { %2696 = vmatpush1.bf16.msra.mxu1 %v3538_v50 }
 0x7ab   :  { %2698 = vmatprep.subr.bf16.mxu1 %v3541_v53 }
 0x7ae   :  { %2700 = vmatpush1.bf16.msra.mxu1 %v3544_v61 }
 0x7af   :  { %2718 = vmatprep.subr.bf16.mxu1 %v3524_v27 }
 0x874   :  { %v693_v56 = vpop.f32.mrb[4].mxu1 }
 0x875   :  { %v695_v57 = vpop.f32.mrb[5].mxu1  ;;  %v700_v62 = vrot.slane %v693_v56, 2 }
 0x876   :  { %v701_v58 = vrot.slane %v695_v57, 2 }
 0x877   :  { %v704_v63 = vadd.f32 %v700_v62, %v3590_v25 }
 0x878   :  { %v705_v59 = vadd.f32 %v701_v58, %v3580_v20 }
 0x879   :  { %v2495_v1 = vmul.f32 -1.442695, %v704_v63 }
 0x87a   :  { %2949 = vtanh.f32 %v705_v59  ;;  %v2496_v13 = vmul.f32 -1.442695, %v705_v59 }
 0x87b   :  { %2951 = vpow2.f32 %v2495_v1 }
 0x884   :  { %v2950_v60 = vpop.eup %2949 }
 0x885   :  { %724 = vrot.lane.b32.xlu1 %v2950_v60, %s3328_s19  ;;  %v2952_v2 = vpop.eup %2951 }
 0x886   :  { %v712_v3 = vadd.f32 1.0, %v2952_v2 }
 0x888   :  { %2953 = vrcp.f32 %v712_v3 }
 0x892   :  { %v2954_v4 = vpop.eup %2953 }
 0x893   :  { %v722_v7 = vmul.f32 %v2954_v4, %v720_v6 }
 0x8f7   :  { %v725_v5 = vpop.permute.xlu1 %724 }
 0x8f8   :  { %v727_v27 = vmul.f32 %v2954_v4, %v725_v5 }
 0x8fa   :  { %729 = vrot.lane.b32.xlu0 %v727_v27, %s3328_s19 }
 0x96c   :  { %v730_v20 = vpop.permute.xlu0 %729 }
 0x96d   :  { %v732_v10 = vadd.f32 %v730_v20, %v722_v7 }
 0x96f   :  { %2955 = vtanh.f32 %v732_v10  ;;  %v830_v40 = vrot.slane %v732_v10, 6 }
 0x970   :  { %2957 = vpow2.f32 %v2496_v13 }
 0x979   :  { %v2956_v11 = vpop.eup %2955 }
 0x97a   :  { %735 = vrot.lane.b32.xlu1 %v2956_v11, %s3328_s19  ;;  %v2958_v25 = vpop.eup %2957 }
 0x97b   :  { %v713_v14 = vadd.f32 1.0, %v2958_v25 }
 0x97d   :  { %2959 = vrcp.f32 %v713_v14 }
 0x987   :  { %v2960_v16 = vpop.eup %2959 }
 0x9ec   :  { %v736_v18 = vpop.permute.xlu1 %735 }
 0x9ed   :  { %v738_v19 = vmul.f32 %v2960_v16, %v736_v18 }
 0x9ef   :  { %v740_v21 = vrot.slane %v738_v19, 6 }
 0x9f1   :  { %2497 = vmatmul.mubr.msk.f32.vlgmr.msra.gmra.mrb[6].mxu0 %vm285_vm0, %v740_v21 }
 0x9f2   :  { %2704 = vmatpush1.bf16.msra.mxu0 %v3526_v28  ;;  %1032 = vmatprep.mubr.f32.mxu0 %v3327_v0 }
 0x9f3   :  { %2706 = vmatprep.subr.bf16.mxu0 %v3529_v34 }
 0x9f6   :  { %2708 = vmatpush1.bf16.msra.mxu0 %v3532_v37 }
 0x9f7   :  { %2710 = vmatprep.subr.bf16.mxu0 %v3535_v45 }
 0x9fa   :  { %2712 = vmatpush1.bf16.msra.mxu0 %v3538_v50 }
 0x9fb   :  { %2714 = vmatprep.subr.bf16.mxu0 %v3541_v53 }
 0x9fe   :  { %2716 = vmatpush1.bf16.msra.mxu0 %v3544_v61 }
 0xac4   :  { %v809_v26 = vpop.f32.mrb[6].mxu0 }
 0xac5   :  { %v811_v29 = vpop.f32.mrb[7].mxu0  ;;  %v814_v33 = vadd.f32 %v809_v26, %v3665_v32 }
 0xac6   :  { %v815_v30 = vadd.f32 %v811_v29, %v3659_v22 }
 0xac7   :  { %v2498_v35 = vmul.f32 -1.442695, %v814_v33 }
 0xac8   :  { %2961 = vtanh.f32 %v815_v30  ;;  %v2499_v24 = vmul.f32 -1.442695, %v815_v30 }
 0xac9   :  { %2963 = vpow2.f32 %v2498_v35 }
 0xad2   :  { %v2962_v31 = vpop.eup %2961 }
 0xad3   :  { %834 = vrot.lane.b32.xlu0 %v2962_v31, %s3328_s19  ;;  %v2964_v36 = vpop.eup %2963 }
 0xad4   :  { %v822_v38 = vadd.f32 1.0, %v2964_v36 }
 0xad6   :  { %2965 = vrcp.f32 %v822_v38 }
 0xae0   :  { %v2966_v17 = vpop.eup %2965 }
 0xae1   :  { %v832_v41 = vmul.f32 %v2966_v17, %v830_v40 }
 0xb45   :  { %v835_v9 = vpop.permute.xlu0 %834 }
 0xb46   :  { %v837_v39 = vmul.f32 %v2966_v17, %v835_v9 }
 0xb48   :  { %839 = vrot.lane.b32.xlu1 %v837_v39, %s3328_s19 }
 0xbba   :  { %v840_v42 = vpop.permute.xlu1 %839 }
 0xbbb   :  { %v842_v43 = vadd.f32 %v840_v42, %v832_v41 }
 0xbbd   :  { %2967 = vtanh.f32 %v842_v43  ;;  %v945_v59 = vrot.slane %v842_v43, 6 }
 0xbbe   :  { %2969 = vpow2.f32 %v2499_v24  ;;  %v1207_v24 = vld [vmem:[#allocation12 + $0x18] sm:$0xff] }
 0xbc7   :  { %v2968_v44 = vpop.eup %2967 }
 0xbc8   :  { %845 = vrot.lane.b32.xlu0 %v2968_v44, %s3328_s19  ;;  %v2970_v8 = vpop.eup %2969  ;;  %v1205_v44 = vld [vmem:[#allocation12 + $0x8] sm:$0xff] }
 0xbc9   :  { %v823_v46 = vadd.f32 1.0, %v2970_v8  ;;  %v1204_v8 = vld [vmem:[#allocation12] sm:$0xff] }
 0xbcb   :  { %2971 = vrcp.f32 %v823_v46  ;;  %v2733_v46 = vpack.c.bf16 %v1207_v24, %v1205_v44  ;;  %v1392_v24 = vld [vmem:[#allocation15 + $0x78] sm:$0xff] }
 0xbcd   :  { %2734 = vmatprep.subr.bf16.mxu0 %v2733_v46  ;;  %v1391_v46 = vld [vmem:[#allocation15 + $0x70] sm:$0xff] }
 0xbd5   :  { %v2972_v48 = vpop.eup %2971 }
 0xc3a   :  { %v846_v49 = vpop.permute.xlu0 %845 }
 0xc3b   :  { %v848_v51 = vmul.f32 %v2972_v48, %v846_v49  ;;  %v1206_v48 = vld [vmem:[#allocation12 + $0x10] sm:$0xff] }
 0xc3c   :  { %v2735_v49 = vpack.c.bf16 %v1206_v48, %v1204_v8  ;;  %v1389_v8 = vld [vmem:[#allocation15 + $0x60] sm:$0xff] }
 0xc3d   :  { %2500 = vmatmul.mubr.msk.f32.vlgmr.msra.gmra.mrb[6].mxu1 %vm285_vm0, %v848_v51 }
 0xc3e   :  { %2720 = vmatpush1.bf16.msra.mxu1 %v3526_v28  ;;  %1148 = vmatprep.mubr.f32.mxu1 %v3327_v0 }
 0xc3f   :  { %2722 = vmatprep.subr.bf16.mxu1 %v3529_v34 }
 0xc42   :  { %2724 = vmatpush1.bf16.msra.mxu1 %v3532_v37 }
 0xc43   :  { %2726 = vmatprep.subr.bf16.mxu1 %v3535_v45 }
 0xc46   :  { %2728 = vmatpush1.bf16.msra.mxu1 %v3538_v50 }
 0xc47   :  { %2730 = vmatprep.subr.bf16.mxu1 %v3541_v53 }
 0xc4a   :  { %2732 = vmatpush1.bf16.msra.mxu1 %v3544_v61 }
 0xd10   :  { %v918_v52 = vpop.f32.mrb[6].mxu1 }
 0xd11   :  { %v920_v54 = vpop.f32.mrb[7].mxu1  ;;  %v925_v34 = vrot.slane %v918_v52, 6 }
 0xd12   :  { %v926_v55 = vrot.slane %v920_v54, 6  ;;  %v1209_v54 = vld [vmem:[#allocation12 + $0x28] sm:$0xff] }
 0xd13   :  { %v929_v37 = vadd.f32 %v925_v34, %v3665_v32  ;;  %v1208_v34 = vld [vmem:[#allocation12 + $0x20] sm:$0xff] }
 0xd14   :  { %v930_v56 = vadd.f32 %v926_v55, %v3659_v22  ;;  %v1211_v55 = vld [vmem:[#allocation12 + $0x38] sm:$0xff] }
 0xd15   :  { %v2501_v57 = vmul.f32 -1.442695, %v929_v37  ;;  %v1210_v37 = vld [vmem:[#allocation12 + $0x30] sm:$0xff] }
 0xd16   :  { %2973 = vtanh.f32 %v930_v56  ;;  %v2502_v2 = vmul.f32 -1.442695, %v930_v56 }
 0xd17   :  { %2975 = vpow2.f32 %v2501_v57  ;;  %v2739_v57 = vpack.c.bf16 %v1210_v37, %v1208_v34 }
 0xd20   :  { %v2974_v28 = vpop.eup %2973 }
 0xd21   :  { %949 = vrot.lane.b32.xlu1 %v2974_v28, %s3328_s19  ;;  %v2976_v45 = vpop.eup %2975  ;;  %v2737_v28 = vpack.c.bf16 %v1211_v55, %v1209_v54 }
 0xd22   :  { %v937_v50 = vadd.f32 1.0, %v2976_v45 }
 0xd24   :  { %2977 = vrcp.f32 %v937_v50 }
 0xd2e   :  { %v2978_v53 = vpop.eup %2977 }
 0xd2f   :  { %v947_v60 = vmul.f32 %v2978_v53, %v945_v59 }
 0xd93   :  { %v950_v58 = vpop.permute.xlu1 %949 }
 0xd94   :  { %v952_v61 = vmul.f32 %v2978_v53, %v950_v58 }
 0xd96   :  { %954 = vrot.lane.b32.xlu0 %v952_v61, %s3328_s19 }
 0xe08   :  { %v955_v62 = vpop.permute.xlu0 %954 }
 0xe09   :  { %v957_v63 = vadd.f32 %v955_v62, %v947_v60 }
 0xe0b   :  { %2979 = vtanh.f32 %v957_v63  ;;  %v1061_v31 = vrot.slane %v957_v63, 6 }
 0xe0c   :  { %2981 = vpow2.f32 %v2502_v2  ;;  %v1380_v2 = vld [vmem:[#allocation15 + $0x18] sm:$0xff] }
 0xe15   :  { %v2980_v1 = vpop.eup %2979 }
 0xe16   :  { %960 = vrot.lane.b32.xlu1 %v2980_v1, %s3328_s19  ;;  %v2982_v3 = vpop.eup %2981  ;;  %v1378_v1 = vld [vmem:[#allocation15 + $0x8] sm:$0xff] }
 0xe17   :  { %v938_v4 = vadd.f32 1.0, %v2982_v3  ;;  %v1377_v3 = vld [vmem:[#allocation15] sm:$0xff] }
 0xe19   :  { %2983 = vrcp.f32 %v938_v4 }
 0xe23   :  { %v2984_v5 = vpop.eup %2983 }
 0xe88   :  { %v961_v27 = vpop.permute.xlu1 %960 }
 0xe89   :  { %v963_v6 = vmul.f32 %v2984_v5, %v961_v27  ;;  %v3705_v5 = vpack.c.bf16 %v1380_v2, %v1378_v1  ;;  %v1382_v27 = vld [vmem:[#allocation15 + $0x28] sm:$0xff] }
 0xe8b   :  { %v965_v7 = vrot.slane %v963_v6, 2  ;;  %2750 = vmatprep.subr.bf16.mxu1 %v3705_v5 }
 0xe8d   :  { %2503 = vmatmul.mubr.msk.f32.vlgmr.msra.gmra.mrb[8].mxu0 %vm285_vm0, %v965_v7 }
 0xe8e   :  { %1281 = vmatprep.mubr.f32.mxu0 %v3327_v0  ;;  %2736 = vmatpush1.bf16.msra.mxu0 %v2735_v49 }
 0xe8f   :  { %2738 = vmatprep.subr.bf16.mxu0 %v2737_v28 }
 0xe92   :  { %2740 = vmatpush1.bf16.msra.mxu0 %v2739_v57 }
 0xf60   :  { %v1034_v20 = vpop.f32.mrb[8].mxu0 }
 0xf61   :  { %v1036_v10 = vpop.f32.mrb[9].mxu0  ;;  %v1041_v14 = vrot.slane %v1034_v20, 4  ;;  %v1381_v20 = vld [vmem:[#allocation15 + $0x20] sm:$0xff] }
 0xf62   :  { %v1042_v11 = vrot.slane %v1036_v10, 4  ;;  %v1383_v10 = vld [vmem:[#allocation15 + $0x30] sm:$0xff] }
 0xf63   :  { %v1045_v16 = vadd.f32 %v1041_v14, %v3665_v32  ;;  %v1198_v14 = vld [vmem:[#allocation10 + $0x10] sm:$0xff] }
 0xf64   :  { %v1046_v13 = vadd.f32 %v1042_v11, %v3659_v22  ;;  %v1197_v11 = vld [vmem:[#allocation10 + $0x8] sm:$0xff] }
 0xf65   :  { %v2504_v18 = vmul.f32 -1.442695, %v1045_v16  ;;  %v3715_v16 = vpack.c.bf16 %v1383_v10, %v1381_v20 }
 0xf66   :  { %2985 = vtanh.f32 %v1046_v13  ;;  %v2505_v17 = vmul.f32 -1.442695, %v1046_v13  ;;  %v1199_v13 = vld [vmem:[#allocation10 + $0x18] sm:$0xff] }
 0xf67   :  { %2987 = vpow2.f32 %v2504_v18  ;;  %v2741_v18 = vpack.c.bf16 %v1199_v13, %v1197_v11 }
 0xf69   :  { %2742 = vmatprep.subr.bf16.mxu0 %v2741_v18 }
 0xf70   :  { %v2986_v25 = vpop.eup %2985 }
 0xf71   :  { %1065 = vrot.lane.b32.xlu0 %v2986_v25, %s3328_s19  ;;  %v2988_v19 = vpop.eup %2987  ;;  %v1196_v25 = vld [vmem:[#allocation10] sm:$0xff] }
 0xf72   :  { %v1053_v21 = vadd.f32 1.0, %v2988_v19  ;;  %v2743_v19 = vpack.c.bf16 %v1198_v14, %v1196_v25 }
 0xf74   :  { %2989 = vrcp.f32 %v1053_v21  ;;  %v1386_v21 = vld [vmem:[#allocation15 + $0x48] sm:$0xff] }
 0xf7e   :  { %v2990_v26 = vpop.eup %2989 }
 0xf7f   :  { %v1063_v33 = vmul.f32 %v2990_v26, %v1061_v31  ;;  %v1387_v31 = vld [vmem:[#allocation15 + $0x50] sm:$0xff] }
 0xfe3   :  { %v1066_v29 = vpop.permute.xlu0 %1065 }
 0xfe4   :  { %v1068_v30 = vmul.f32 %v2990_v26, %v1066_v29  ;;  %v1388_v26 = vld [vmem:[#allocation15 + $0x58] sm:$0xff] }
 0xfe5   :  { %v3718_v29 = vpack.c.bf16 %v1388_v26, %v1386_v21 }
 0xfe6   :  { %1070 = vrot.lane.b32.xlu1 %v1068_v30, %s3328_s19  ;;  %v1385_v30 = vld [vmem:[#allocation15 + $0x40] sm:$0xff] }
0x1058   :  { %v1071_v35 = vpop.permute.xlu1 %1070 }
0x1059   :  { %v3690_v36 = vadd.f32 %v1071_v35, %v1063_v33  ;;  %v3721_v33 = vpack.c.bf16 %v1387_v31, %v1385_v30 }
0x105b   :  { %2991 = vtanh.f32 %v3690_v36  ;;  %v1177_v35 = vrot.slane %v3690_v36, 6 }
0x105c   :  { %2993 = vpow2.f32 %v2505_v17  ;;  %v1203_v17 = vld [vmem:[#allocation10 + $0x38] sm:$0xff] }
0x1065   :  { %v2992_v38 = vpop.eup %2991 }
0x1066   :  { %1076 = vrot.lane.b32.xlu0 %v2992_v38, %s3328_s19  ;;  %v2994_v9 = vpop.eup %2993  ;;  %v1201_v38 = vld [vmem:[#allocation10 + $0x28] sm:$0xff] }
0x1067   :  { %v1054_v39 = vadd.f32 1.0, %v2994_v9 }
0x1069   :  { %2995 = vrcp.f32 %v1054_v39  ;;  %v2745_v39 = vpack.c.bf16 %v1203_v17, %v1201_v38 }
0x1073   :  { %v2996_v40 = vpop.eup %2995 }
0x10d8   :  { %v1077_v41 = vpop.permute.xlu0 %1076 }
0x10d9   :  { %v1079_v42 = vmul.f32 %v2996_v40, %v1077_v41  ;;  %v1200_v40 = vld [vmem:[#allocation10 + $0x20] sm:$0xff]  ;;  %v1202_v41 = vld [vmem:[#allocation10 + $0x30] sm:$0xff] }
0x10da   :  { %v2747_v44 = vpack.c.bf16 %v1202_v41, %v1200_v40 }
0x10db   :  { %v1081_v43 = vrot.slane %v1079_v42, 4  ;;  %v1390_v42 = vld [vmem:[#allocation15 + $0x68] sm:$0xff] }
0x10dc   :  { %v3726_v49 = vpack.c.bf16 %v1392_v24, %v1390_v42 }
0x10dd   :  { %2506 = vmatmul.mubr.msk.f32.vlgmr.msra.gmra.mrb[8].mxu1 %vm285_vm0, %v1081_v43 }
0x10de   :  { %1457 = vmatprep.mubr.f32.mxu1 %v3327_v0 }
0x11b0   :  { %v1150_v51 = vpop.f32.mrb[8].mxu1 }
0x11b1   :  { %v1152_v52 = vpop.f32.mrb[9].mxu1  ;;  %v1157_v53 = vrot.slane %v1150_v51, 2  ;;  %v3728_v51 = vpack.c.bf16 %v1391_v46, %v1389_v8 }
0x11b2   :  { %v1158_v56 = vrot.slane %v1152_v52, 2 }
0x11b3   :  { %v1161_v58 = vadd.f32 %v1157_v53, %v3665_v32  ;;  %v1384_v32 = vld [vmem:[#allocation15 + $0x38] sm:$0xff] }
0x11b4   :  { %v3697_v45 = vadd.f32 %v1158_v56, %v3659_v22  ;;  %v3710_v7 = vpack.c.bf16 %v1384_v32, %v1382_v27 }
0x11b5   :  { %v2507_v61 = vmul.f32 -1.442695, %v1161_v58 }
0x11b6   :  { %2997 = vtanh.f32 %v3697_v45  ;;  %v2508_v52 = vmul.f32 -1.442695, %v3697_v45 }
0x11b7   :  { %2999 = vpow2.f32 %v2507_v61 }
0x11c0   :  { %v2998_v50 = vpop.eup %2997 }
0x11c1   :  { %1181 = vrot.lane.b32.xlu1 %v2998_v50, %s3328_s19  ;;  %v3000_v59 = vpop.eup %2999  ;;  %v1363_v50 = vld [vmem:[#allocation13] sm:$0x3] }
0x11c2   :  { %v1169_v60 = vadd.f32 1.0, %v3000_v59  ;;  %v1368_v53 = vrot.slane %v1363_v50, %v184_v23  ;;  %v1372_v58 = vrot.slane %v1363_v50, %v188_v15 }
0x11c4   :  { %3001 = vrcp.f32 %v1169_v60 }
0x11c5   :  { %1212 = vrot.lane.b32.xlu1 %v3595_v47, %s3329_s2  ;;  %v1379_v47 = vld [vmem:[#allocation15 + $0x10] sm:$0xff] }
0x11c6   :  { %v3708_v6 = vpack.c.bf16 %v1379_v47, %v1377_v3 }
0x11c8   :  { %2752 = vmatpush1.bf16.msra.mxu1 %v3708_v6 }
0x11c9   :  { %2754 = vmatprep.subr.bf16.mxu1 %v3710_v7 }
0x11cc   :  { %2756 = vmatpush1.bf16.msra.mxu1 %v3715_v16 }
0x11cd   :  { %2758 = vmatprep.subr.bf16.mxu1 %v3718_v29 }
0x11ce   :  { %v3002_v22 = vpop.eup %3001 }
0x11cf   :  { %v1179_v9 = vmul.f32 %v3002_v22, %v1177_v35 }
0x11d0   :  { %2760 = vmatpush1.bf16.msra.mxu1 %v3721_v33 }
0x11d1   :  { %2762 = vmatprep.subr.bf16.mxu1 %v3726_v49 }
0x11d4   :  { %2764 = vmatpush1.bf16.msra.mxu1 %v3728_v51 }
0x11d5   :  { %2782 = vmatprep.subr.bf16.mxu1 %v3705_v5 }
0x11d7   :  { %1458 = vmatmul.mubr.f32.vlgmr.msra.gmra.mrb[10].mxu1 %v3327_v0 }
0x11d8   :  { %2784 = vmatpush1.bf16.msra.mxu1 %v3708_v6  ;;  %1680 = vmatprep.mubr.f32.mxu1 %v3327_v0 }
0x11d9   :  { %2786 = vmatprep.subr.bf16.mxu1 %v3710_v7 }
0x11dc   :  { %2788 = vmatpush1.bf16.msra.mxu1 %v3715_v16 }
0x11dd   :  { %2790 = vmatprep.subr.bf16.mxu1 %v3718_v29 }
0x11e0   :  { %2792 = vmatpush1.bf16.msra.mxu1 %v3721_v33 }
0x11e1   :  { %2794 = vmatprep.subr.bf16.mxu1 %v3726_v49 }
0x11e4   :  { %2796 = vmatpush1.bf16.msra.mxu1 %v3728_v51 }
0x11e5   :  { %2814 = vmatprep.subr.bf16.mxu1 %v3705_v5 }
0x1233   :  { %v1182_v62 = vpop.permute.xlu1 %1181 }
0x1234   :  { %v1184_v63 = vmul.f32 %v3002_v22, %v1182_v62 }
0x1236   :  { %1186 = vrot.lane.b32.xlu0 %v1184_v63, %s3328_s19 }
0x1237   :  { %v1213_v4 = vpop.permute.xlu1 %1212 }
0x1238   :  { %2509 = vmatmul.mubr.msk.f32.vlgmr.msra.gmra.mrb[10].mxu0 %vm1214_vm1, %v1213_v4 }
0x1239   :  { %1356 = vmatprep.mubr.f32.mxu0 %v3327_v0  ;;  %2744 = vmatpush1.bf16.msra.mxu0 %v2743_v19 }
0x123a   :  { %2746 = vmatprep.subr.bf16.mxu0 %v2745_v39 }
0x123d   :  { %2748 = vmatpush1.bf16.msra.mxu0 %v2747_v44 }
0x123e   :  { %2766 = vmatprep.subr.bf16.mxu0 %v3705_v5 }
0x12a8   :  { %v1187_v43 = vpop.permute.xlu0 %1186 }
0x12a9   :  { %v1189_v48 = vadd.f32 %v1187_v43, %v1179_v9 }
0x12aa   :  { %v1459_v57 = vpop.f32.mrb[10].mxu1 }
0x12ab   :  { %3003 = vtanh.f32 %v1189_v48  ;;  %v1461_v45 = vpop.f32.mrb[11].mxu1 }
0x12ac   :  { %3005 = vpow2.f32 %v2508_v52 }
0x12b5   :  { %v3004_v36 = vpop.eup %3003 }
0x12b6   :  { %1192 = vrot.lane.b32.xlu0 %v3004_v36, %s3328_s19  ;;  %v3006_v54 = vpop.eup %3005 }
0x12b7   :  { %v1170_v55 = vadd.f32 1.0, %v3006_v54 }
0x12b9   :  { %3007 = vrcp.f32 %v1170_v55 }
0x12c3   :  { %v3008_v56 = vpop.eup %3007 }
0x1328   :  { %v1193_v28 = vpop.permute.xlu0 %1192 }
0x1329   :  { %v1195_v34 = vmul.f32 %v3008_v56, %v1193_v28 }
0x132b   :  { %v1289_v37 = vrot.slane %v1195_v34, 6 }
0x132d   :  { %2510 = vmatmul.mubr.msk.f32.vlgmr.msra.gmra.mrb[10].mxu0 %vm1214_vm1, %v1289_v37 }
0x132e   :  { %2768 = vmatpush1.bf16.msra.mxu0 %v3708_v6  ;;  %1569 = vmatprep.mubr.f32.mxu0 %v3327_v0 }
0x132f   :  { %2770 = vmatprep.subr.bf16.mxu0 %v3710_v7 }
0x1332   :  { %2772 = vmatpush1.bf16.msra.mxu0 %v3715_v16 }
0x1333   :  { %2774 = vmatprep.subr.bf16.mxu0 %v3718_v29 }
0x1336   :  { %2776 = vmatpush1.bf16.msra.mxu0 %v3721_v33 }
0x1337   :  { %2778 = vmatprep.subr.bf16.mxu0 %v3726_v49 }
0x133a   :  { %2780 = vmatpush1.bf16.msra.mxu0 %v3728_v51 }
0x133b   :  { %2798 = vmatprep.subr.bf16.mxu0 %v3705_v5 }
0x1400   :  { %v1358_v61 = vpop.f32.mrb[10].mxu0 }
0x1401   :  { %v3760_v59 = vadd.f32 %v1368_v53, %v1358_v61  ;;  %v1360_v60 = vpop.f32.mrb[11].mxu0 }
0x1402   :  { %v3762_v22 = vadd.f32 %v1372_v58, %v1360_v60 }
0x1403   :  { %v1464_v1 = vadd.f32 %v1459_v57, %v3760_v59 }
0x1404   :  { %v1465_v62 = vadd.f32 %v1461_v45, %v3762_v22 }
0x1405   :  { %v2511_v2 = vmul.f32 -1.442695, %v1464_v1 }
0x1406   :  { %3009 = vtanh.f32 %v1465_v62  ;;  %v2512_v10 = vmul.f32 -1.442695, %v1465_v62 }
0x1407   :  { %3011 = vpow2.f32 %v2511_v2 }
0x1410   :  { %v3010_v63 = vpop.eup %3009 }
0x1411   :  { %1481 = vrot.lane.b32.xlu1 %v3010_v63, %s3328_s19  ;;  %v3012_v23 = vpop.eup %3011 }
0x1412   :  { %v1472_v3 = vadd.f32 1.0, %v3012_v23 }
0x1414   :  { %3013 = vrcp.f32 %v1472_v3 }
0x141e   :  { %v3014_v12 = vpop.eup %3013 }
0x141f   :  { %v1479_v47 = vmul.f32 0.0, %v3014_v12 }
0x1483   :  { %v1482_v15 = vpop.permute.xlu1 %1481 }
0x1484   :  { %v1484_v4 = vmul.f32 %v3014_v12, %v1482_v15 }
0x1486   :  { %1486 = vrot.lane.b32.xlu0 %v1484_v4, %s3328_s19 }
0x14f8   :  { %v1487_v27 = vpop.permute.xlu0 %1486 }
0x14f9   :  { %v1489_v32 = vadd.f32 %v1487_v27, %v1479_v47 }
0x14fb   :  { %3015 = vtanh.f32 %v1489_v32 }
0x14fc   :  { %3017 = vpow2.f32 %v2512_v10 }
0x1505   :  { %v3016_v20 = vpop.eup %3015 }
0x1506   :  { %1492 = vrot.lane.b32.xlu1 %v3016_v20, %s3328_s19  ;;  %v3018_v11 = vpop.eup %3017 }
0x1507   :  { %v1473_v13 = vadd.f32 1.0, %v3018_v11 }
0x1509   :  { %3019 = vrcp.f32 %v1473_v13 }
0x1513   :  { %v3020_v25 = vpop.eup %3019 }
0x1578   :  { %v1493_v14 = vpop.permute.xlu1 %1492 }
0x1579   :  { %v3769_v18 = vmul.f32 %v3020_v25, %v1493_v14 }
0x157b   :  { %1497 = vst.msk [vmem:[#allocation2] sm:$0x3] %vm1496_vm2, %v3769_v18  ;;  %2513 = vmatmul.mubr.msk.f32.vlgmr.msra.gmra.mrb[12].mxu0 %vm285_vm0, %v3769_v18 }
0x157c   :  { %2800 = vmatpush1.bf16.msra.mxu0 %v3708_v6  ;;  %1791 = vmatprep.mubr.f32.mxu0 %v3327_v0 }
0x157d   :  { %2802 = vmatprep.subr.bf16.mxu0 %v3710_v7 }
0x1580   :  { %2804 = vmatpush1.bf16.msra.mxu0 %v3715_v16 }
0x1581   :  { %2806 = vmatprep.subr.bf16.mxu0 %v3718_v29 }
0x1584   :  { %2808 = vmatpush1.bf16.msra.mxu0 %v3721_v33 }
0x1585   :  { %2810 = vmatprep.subr.bf16.mxu0 %v3726_v49 }
0x1588   :  { %2812 = vmatpush1.bf16.msra.mxu0 %v3728_v51 }
0x1589   :  { %2830 = vmatprep.subr.bf16.mxu0 %v3705_v5 }
0x164e   :  { %v1571_v19 = vpop.f32.mrb[12].mxu0 }
0x164f   :  { %v1573_v21 = vpop.f32.mrb[13].mxu0  ;;  %v1576_v31 = vadd.f32 %v1571_v19, %v3760_v59 }
0x1650   :  { %v1577_v26 = vadd.f32 %v1573_v21, %v3762_v22 }
0x1651   :  { %v2514_v35 = vmul.f32 -1.442695, %v1576_v31 }
0x1652   :  { %3021 = vtanh.f32 %v1577_v26  ;;  %v2515_v24 = vmul.f32 -1.442695, %v1577_v26 }
0x1653   :  { %3023 = vpow2.f32 %v2514_v35 }
0x165c   :  { %v3022_v30 = vpop.eup %3021 }
0x165d   :  { %1593 = vrot.lane.b32.xlu0 %v3022_v30, %s3328_s19  ;;  %v3024_v38 = vpop.eup %3023 }
0x165e   :  { %v1584_v17 = vadd.f32 1.0, %v3024_v38 }
0x1660   :  { %3025 = vrcp.f32 %v1584_v17 }
0x166a   :  { %v3026_v9 = vpop.eup %3025 }
0x166b   :  { %v1591_v41 = vmul.f32 %v3026_v9, %v1489_v32 }
0x16cf   :  { %v1594_v39 = vpop.permute.xlu0 %1593 }
0x16d0   :  { %v1596_v40 = vmul.f32 %v3026_v9, %v1594_v39 }
0x16d2   :  { %1598 = vrot.lane.b32.xlu1 %v1596_v40, %s3328_s19 }
0x1744   :  { %v1599_v42 = vpop.permute.xlu1 %1598 }
0x1745   :  { %v1601_v43 = vadd.f32 %v1599_v42, %v1591_v41 }
0x1747   :  { %3027 = vtanh.f32 %v1601_v43 }
0x1748   :  { %3029 = vpow2.f32 %v2515_v24 }
0x1751   :  { %v3028_v44 = vpop.eup %3027 }
0x1752   :  { %1604 = vrot.lane.b32.xlu0 %v3028_v44, %s3328_s19  ;;  %v3030_v8 = vpop.eup %3029 }
0x1753   :  { %v1585_v46 = vadd.f32 1.0, %v3030_v8 }
0x1755   :  { %3031 = vrcp.f32 %v1585_v46 }
0x175f   :  { %v3032_v48 = vpop.eup %3031 }
0x17c4   :  { %v1605_v36 = vpop.permute.xlu0 %1604 }
0x17c5   :  { %v3789_v52 = vmul.f32 %v3032_v48, %v1605_v36 }
0x17c7   :  { %1608 = vst.msk [vmem:[#allocation2 + $0x2] sm:$0x3] %vm1496_vm2, %v3789_v52  ;;  %2516 = vmatmul.mubr.msk.f32.vlgmr.msra.gmra.mrb[12].mxu1 %vm285_vm0, %v3789_v52 }
0x17c8   :  { %2816 = vmatpush1.bf16.msra.mxu1 %v3708_v6  ;;  %1902 = vmatprep.mubr.f32.mxu1 %v3327_v0 }
0x17c9   :  { %2818 = vmatprep.subr.bf16.mxu1 %v3710_v7 }
0x17cc   :  { %2820 = vmatpush1.bf16.msra.mxu1 %v3715_v16 }
0x17cd   :  { %2822 = vmatprep.subr.bf16.mxu1 %v3718_v29 }
0x17d0   :  { %2824 = vmatpush1.bf16.msra.mxu1 %v3721_v33 }
0x17d1   :  { %2826 = vmatprep.subr.bf16.mxu1 %v3726_v49 }
0x17d4   :  { %2828 = vmatpush1.bf16.msra.mxu1 %v3728_v51 }
0x17d5   :  { %2846 = vmatprep.subr.bf16.mxu1 %v3705_v5 }
0x189a   :  { %v1682_v54 = vpop.f32.mrb[12].mxu1 }
0x189b   :  { %v1684_v55 = vpop.f32.mrb[13].mxu1  ;;  %v1687_v34 = vadd.f32 %v1682_v54, %v3760_v59 }
0x189c   :  { %v1688_v56 = vadd.f32 %v1684_v55, %v3762_v22 }
0x189d   :  { %v2517_v37 = vmul.f32 -1.442695, %v1687_v34 }
0x189e   :  { %3033 = vtanh.f32 %v1688_v56  ;;  %v2518_v1 = vmul.f32 -1.442695, %v1688_v56 }
0x189f   :  { %3035 = vpow2.f32 %v2517_v37 }
0x18a8   :  { %v3034_v28 = vpop.eup %3033 }
0x18a9   :  { %1704 = vrot.lane.b32.xlu1 %v3034_v28, %s3328_s19  ;;  %v3036_v57 = vpop.eup %3035 }
0x18aa   :  { %v1695_v45 = vadd.f32 1.0, %v3036_v57 }
0x18ac   :  { %3037 = vrcp.f32 %v1695_v45 }
0x18b6   :  { %v3038_v50 = vpop.eup %3037 }
0x18b7   :  { %v1702_v61 = vmul.f32 %v3038_v50, %v1601_v43 }
0x191b   :  { %v1705_v53 = vpop.permute.xlu1 %1704 }
0x191c   :  { %v1707_v58 = vmul.f32 %v3038_v50, %v1705_v53 }
0x191e   :  { %1709 = vrot.lane.b32.xlu0 %v1707_v58, %s3328_s19 }
0x1990   :  { %v1710_v60 = vpop.permute.xlu0 %1709 }
0x1991   :  { %v1712_v62 = vadd.f32 %v1710_v60, %v1702_v61 }
0x1993   :  { %3039 = vtanh.f32 %v1712_v62 }
0x1994   :  { %3041 = vpow2.f32 %v2518_v1 }
0x199d   :  { %v3040_v63 = vpop.eup %3039 }
0x199e   :  { %1715 = vrot.lane.b32.xlu1 %v3040_v63, %s3328_s19  ;;  %v3042_v2 = vpop.eup %3041 }
0x199f   :  { %v1696_v23 = vadd.f32 1.0, %v3042_v2 }
0x19a1   :  { %3043 = vrcp.f32 %v1696_v23 }
0x19ab   :  { %v3044_v3 = vpop.eup %3043 }
0x1a10   :  { %v1716_v12 = vpop.permute.xlu1 %1715 }
0x1a11   :  { %v3809_v15 = vmul.f32 %v3044_v3, %v1716_v12 }
0x1a13   :  { %1719 = vst.msk [vmem:[#allocation2 + $0x4] sm:$0x3] %vm1496_vm2, %v3809_v15  ;;  %2519 = vmatmul.mubr.msk.f32.vlgmr.msra.gmra.mrb[14].mxu0 %vm285_vm0, %v3809_v15 }
0x1a14   :  { %2832 = vmatpush1.bf16.msra.mxu0 %v3708_v6  ;;  %2013 = vmatprep.mubr.f32.mxu0 %v3327_v0 }
0x1a15   :  { %2834 = vmatprep.subr.bf16.mxu0 %v3710_v7 }
0x1a18   :  { %2836 = vmatpush1.bf16.msra.mxu0 %v3715_v16 }
0x1a19   :  { %2838 = vmatprep.subr.bf16.mxu0 %v3718_v29 }
0x1a1c   :  { %2840 = vmatpush1.bf16.msra.mxu0 %v3721_v33 }
0x1a1d   :  { %2842 = vmatprep.subr.bf16.mxu0 %v3726_v49 }
0x1a20   :  { %2844 = vmatpush1.bf16.msra.mxu0 %v3728_v51 }
0x1a21   :  { %2862 = vmatprep.subr.bf16.mxu0 %v3705_v5 }
0x1ae6   :  { %v1793_v4 = vpop.f32.mrb[14].mxu0 }
0x1ae7   :  { %v1795_v47 = vpop.f32.mrb[15].mxu0  ;;  %v1798_v20 = vadd.f32 %v1793_v4, %v3760_v59 }
0x1ae8   :  { %v1799_v27 = vadd.f32 %v1795_v47, %v3762_v22 }
0x1ae9   :  { %v2520_v10 = vmul.f32 -1.442695, %v1798_v20 }
0x1aea   :  { %3045 = vtanh.f32 %v1799_v27  ;;  %v2521_v31 = vmul.f32 -1.442695, %v1799_v27 }
0x1aeb   :  { %3047 = vpow2.f32 %v2520_v10 }
0x1af4   :  { %v3046_v32 = vpop.eup %3045 }
0x1af5   :  { %1815 = vrot.lane.b32.xlu0 %v3046_v32, %s3328_s19  ;;  %v3048_v11 = vpop.eup %3047 }
0x1af6   :  { %v1806_v13 = vadd.f32 1.0, %v3048_v11 }
0x1af8   :  { %3049 = vrcp.f32 %v1806_v13 }
0x1b02   :  { %v3050_v25 = vpop.eup %3049 }
0x1b03   :  { %v1813_v5 = vmul.f32 %v3050_v25, %v1712_v62 }
0x1b67   :  { %v1816_v14 = vpop.permute.xlu0 %1815 }
0x1b68   :  { %v1818_v19 = vmul.f32 %v3050_v25, %v1816_v14 }
0x1b6a   :  { %1820 = vrot.lane.b32.xlu1 %v1818_v19, %s3328_s19 }
0x1bdc   :  { %v1821_v21 = vpop.permute.xlu1 %1820 }
0x1bdd   :  { %v1823_v26 = vadd.f32 %v1821_v21, %v1813_v5 }
0x1bdf   :  { %3051 = vtanh.f32 %v1823_v26 }
0x1be0   :  { %3053 = vpow2.f32 %v2521_v31 }
0x1be9   :  { %v3052_v30 = vpop.eup %3051 }
0x1bea   :  { %1826 = vrot.lane.b32.xlu0 %v3052_v30, %s3328_s19  ;;  %v3054_v35 = vpop.eup %3053 }
0x1beb   :  { %v1807_v38 = vadd.f32 1.0, %v3054_v35 }
0x1bed   :  { %3055 = vrcp.f32 %v1807_v38 }
0x1bf7   :  { %v3056_v17 = vpop.eup %3055 }
0x1c5c   :  { %v1827_v9 = vpop.permute.xlu0 %1826 }
0x1c5d   :  { %v3829_v39 = vmul.f32 %v3056_v17, %v1827_v9 }
0x1c5f   :  { %1830 = vst.msk [vmem:[#allocation2 + $0x6] sm:$0x3] %vm1496_vm2, %v3829_v39  ;;  %2522 = vmatmul.mubr.msk.f32.vlgmr.msra.gmra.mrb[14].mxu1 %vm285_vm0, %v3829_v39 }
0x1c60   :  { %2848 = vmatpush1.bf16.msra.mxu1 %v3708_v6  ;;  %2124 = vmatprep.mubr.f32.mxu1 %v3327_v0 }
0x1c61   :  { %2850 = vmatprep.subr.bf16.mxu1 %v3710_v7 }
0x1c64   :  { %2852 = vmatpush1.bf16.msra.mxu1 %v3715_v16 }
0x1c65   :  { %2854 = vmatprep.subr.bf16.mxu1 %v3718_v29 }
0x1c68   :  { %2856 = vmatpush1.bf16.msra.mxu1 %v3721_v33 }
0x1c69   :  { %2858 = vmatprep.subr.bf16.mxu1 %v3726_v49 }
0x1c6c   :  { %2860 = vmatpush1.bf16.msra.mxu1 %v3728_v51 }
0x1d32   :  { %v1904_v40 = vpop.f32.mrb[14].mxu1 }
0x1d33   :  { %v1906_v41 = vpop.f32.mrb[15].mxu1  ;;  %v1909_v44 = vadd.f32 %v1904_v40, %v3760_v59 }
0x1d34   :  { %v1910_v42 = vadd.f32 %v1906_v41, %v3762_v22 }
0x1d35   :  { %v2523_v24 = vmul.f32 -1.442695, %v1909_v44 }
0x1d36   :  { %3057 = vtanh.f32 %v1910_v42  ;;  %v2524_v37 = vmul.f32 -1.442695, %v1910_v42 }
0x1d37   :  { %3059 = vpow2.f32 %v2523_v24 }
0x1d40   :  { %v3058_v43 = vpop.eup %3057 }
0x1d41   :  { %1926 = vrot.lane.b32.xlu1 %v3058_v43, %s3328_s19  ;;  %v3060_v8 = vpop.eup %3059 }
0x1d42   :  { %v1917_v46 = vadd.f32 1.0, %v3060_v8 }
0x1d44   :  { %3061 = vrcp.f32 %v1917_v46 }
0x1d4e   :  { %v3062_v48 = vpop.eup %3061 }
0x1d4f   :  { %v1924_v55 = vmul.f32 %v3062_v48, %v1823_v26 }
0x1db3   :  { %v1927_v36 = vpop.permute.xlu1 %1926 }
0x1db4   :  { %v1929_v54 = vmul.f32 %v3062_v48, %v1927_v36 }
0x1db6   :  { %1931 = vrot.lane.b32.xlu0 %v1929_v54, %s3328_s19 }
0x1e28   :  { %v1932_v56 = vpop.permute.xlu0 %1931 }
0x1e29   :  { %v1934_v28 = vadd.f32 %v1932_v56, %v1924_v55 }
0x1e2b   :  { %3063 = vtanh.f32 %v1934_v28 }
0x1e2c   :  { %3065 = vpow2.f32 %v2524_v37 }
0x1e35   :  { %v3064_v34 = vpop.eup %3063 }
0x1e36   :  { %1937 = vrot.lane.b32.xlu1 %v3064_v34, %s3328_s19  ;;  %v3066_v57 = vpop.eup %3065 }
0x1e37   :  { %v1918_v45 = vadd.f32 1.0, %v3066_v57 }
0x1e39   :  { %3067 = vrcp.f32 %v1918_v45 }
0x1e43   :  { %v3068_v50 = vpop.eup %3067 }
0x1ea8   :  { %v1938_v53 = vpop.permute.xlu1 %1937 }
0x1ea9   :  { %v3848_v58 = vmul.f32 %v3068_v50, %v1938_v53 }
0x1eab   :  { %1941 = vst.msk [vmem:[#allocation2 + $0x8] sm:$0x3] %vm1496_vm2, %v3848_v58  ;;  %2525 = vmatmul.mubr.msk.f32.vlgmr.msra.gmra.mrb[16].mxu0 %vm285_vm0, %v3848_v58 }
0x1eac   :  { %2864 = vmatpush1.bf16.msra.mxu0 %v3708_v6  ;;  %2235 = vmatprep.mubr.f32.mxu0 %v3327_v0 }
0x1ead   :  { %2866 = vmatprep.subr.bf16.mxu0 %v3710_v7 }
0x1eb0   :  { %2868 = vmatpush1.bf16.msra.mxu0 %v3715_v16 }
0x1eb1   :  { %2870 = vmatprep.subr.bf16.mxu0 %v3718_v29 }
0x1eb4   :  { %2872 = vmatpush1.bf16.msra.mxu0 %v3721_v33 }
0x1eb5   :  { %2874 = vmatprep.subr.bf16.mxu0 %v3726_v49 }
0x1eb8   :  { %2876 = vmatpush1.bf16.msra.mxu0 %v3728_v51 }
0x1f7e   :  { %v2015_v61 = vpop.f32.mrb[16].mxu0 }
0x1f7f   :  { %v2017_v60 = vpop.f32.mrb[17].mxu0  ;;  %v2020_v0 = vadd.f32 %v2015_v61, %v3760_v59 }
0x1f80   :  { %v2021_v62 = vadd.f32 %v2017_v60, %v3762_v22 }
0x1f81   :  { %v2526_v7 = vmul.f32 -1.442695, %v2020_v0 }
0x1f82   :  { %3069 = vtanh.f32 %v2021_v62  ;;  %v2527_v3 = vmul.f32 -1.442695, %v2021_v62  ;;  %v2288_v62 = vld [vmem:[%s3951_s9] sm:$0xff] }
0x1f83   :  { %3071 = vpow2.f32 %v2526_v7  ;;  %v2291_v7 = vld [vmem:[%s3951_s9 + $0x18] sm:$0xff] }
0x1f8c   :  { %v3070_v6 = vpop.eup %3069 }
0x1f8d   :  { %2037 = vrot.lane.b32.xlu0 %v3070_v6, %s3328_s19  ;;  %v3072_v16 = vpop.eup %3071  ;;  %v2289_v6 = vld [vmem:[%s3951_s9 + $0x8] sm:$0xff] }
0x1f8e   :  { %v2028_v29 = vadd.f32 1.0, %v3072_v16  ;;  %v2877_v0 = vpack.c.bf16 %v2289_v6, %v2288_v62 }
0x1f90   :  { %3073 = vrcp.f32 %v2028_v29  ;;  %2878 = vmatprep.subr.bf16.mxu1 %v2877_v0  ;;  %v2282_v29 = vld [vmem:[#allocation16] sm:$0xff] }
0x1f9a   :  { %v3074_v33 = vpop.eup %3073 }
0x1f9b   :  { %v2035_v51 = vmul.f32 %v3074_v33, %v1934_v28 }
0x1fff   :  { %v2038_v63 = vpop.permute.xlu0 %2037 }
0x2000   :  { %v2040_v49 = vmul.f32 %v3074_v33, %v2038_v63  ;;  %v2283_v33 = vld [vmem:[#allocation16 + $0x8] sm:$0xff] }
0x2001   :  { %v2885_v63 = vpack.c.bf16 %v2283_v33, %v2282_v29 }
0x2002   :  { %2042 = vrot.lane.b32.xlu1 %v2040_v49, %s3328_s19 }
0x2074   :  { %v2043_v1 = vpop.permute.xlu1 %2042 }
0x2075   :  { %v2045_v2 = vadd.f32 %v2043_v1, %v2035_v51 }
0x2077   :  { %3075 = vtanh.f32 %v2045_v2 }
0x2078   :  { %3077 = vpow2.f32 %v2527_v3 }
0x2081   :  { %v3076_v23 = vpop.eup %3075 }
0x2082   :  { %2048 = vrot.lane.b32.xlu0 %v3076_v23, %s3328_s19  ;;  %v3078_v12 = vpop.eup %3077 }
0x2083   :  { %v2029_v4 = vadd.f32 1.0, %v3078_v12 }
0x2085   :  { %3079 = vrcp.f32 %v2029_v4 }
0x208f   :  { %v3080_v47 = vpop.eup %3079 }
0x20f4   :  { %v2049_v27 = vpop.permute.xlu0 %2048 }
0x20f5   :  { %v3867_v32 = vmul.f32 %v3080_v47, %v2049_v27  ;;  %v2284_v47 = vld [vmem:[#allocation16 + $0x10] sm:$0xff]  ;;  %v2285_v27 = vld [vmem:[#allocation16 + $0x18] sm:$0xff] }
0x20f7   :  { %2052 = vst.msk [vmem:[#allocation2 + $0xa] sm:$0x3] %vm1496_vm2, %v3867_v32  ;;  %2528 = vmatmul.mubr.msk.f32.vlgmr.msra.gmra.mrb[16].mxu1 %vm285_vm0, %v3867_v32 }
0x20f8   :  { %2880 = vmatpush3.bf16.msra.mxu1 %v2877_v0 }
0x21ca   :  { %v2126_v20 = vpop.f32.mrb[16].mxu1 }
0x21cb   :  { %v2128_v10 = vpop.f32.mrb[17].mxu1  ;;  %v2131_v25 = vadd.f32 %v2126_v20, %v3760_v59 }
0x21cc   :  { %v2132_v11 = vadd.f32 %v2128_v10, %v3762_v22  ;;  %v2280_v10 = vld [vmem:[#allocation2] sm:$0xff] }
0x21cd   :  { %v2529_v14 = vmul.f32 -1.442695, %v2131_v25 }
0x21ce   :  { %3081 = vtanh.f32 %v2132_v11  ;;  %v2530_v9 = vmul.f32 -1.442695, %v2132_v11  ;;  %v2538_v11 = vld [vmem:[%s3952_s10] ss:$0 sm:$0xff] }
0x21cf   :  { %3083 = vpow2.f32 %v2529_v14 }
0x21d8   :  { %v3082_v13 = vpop.eup %3081 }
0x21d9   :  { %2148 = vrot.lane.b32.xlu1 %v3082_v13, %s3328_s19  ;;  %v3084_v19 = vpop.eup %3083 }
0x21da   :  { %v2139_v5 = vadd.f32 1.0, %v3084_v19 }
0x21dc   :  { %3085 = vrcp.f32 %v2139_v5 }
0x21e6   :  { %v3086_v21 = vpop.eup %3085 }
0x21e7   :  { %v2146_v31 = vmul.f32 %v3086_v21, %v2045_v2 }
0x224b   :  { %v2149_v26 = vpop.permute.xlu1 %2148 }
0x224c   :  { %v2151_v30 = vmul.f32 %v3086_v21, %v2149_v26 }
0x224e   :  { %2153 = vrot.lane.b32.xlu0 %v2151_v30, %s3328_s19 }
0x22c0   :  { %v2154_v35 = vpop.permute.xlu0 %2153 }
0x22c1   :  { %v2156_v38 = vadd.f32 %v2154_v35, %v2146_v31 }
0x22c3   :  { %3087 = vtanh.f32 %v2156_v38 }
0x22c4   :  { %3089 = vpow2.f32 %v2530_v9 }
0x22cd   :  { %v3088_v17 = vpop.eup %3087 }
0x22ce   :  { %2159 = vrot.lane.b32.xlu1 %v3088_v17, %s3328_s19  ;;  %v3090_v40 = vpop.eup %3089 }
0x22cf   :  { %v2140_v41 = vadd.f32 1.0, %v3090_v40 }
0x22d1   :  { %3091 = vrcp.f32 %v2140_v41 }
0x22db   :  { %v3092_v42 = vpop.eup %3091 }
0x2340   :  { %v2160_v43 = vpop.permute.xlu1 %2159 }
0x2341   :  { %v2162_v44 = vmul.f32 %v3092_v42, %v2160_v43 }
0x2343   :  { %2163 = vst.msk [vmem:[#allocation2 + $0xc] sm:$0x3] %vm1496_vm2, %v2162_v44  ;;  %2531 = vmatmul.mubr.msk.f32.vlgmr.msra.gmra.mrb[18].mxu0 %vm285_vm0, %v2162_v44 }
0x2416   :  { %v2237_v24 = vpop.f32.mrb[18].mxu0 }
0x2417   :  { %v2239_v8 = vpop.f32.mrb[19].mxu0  ;;  %v2242_v36 = vadd.f32 %v2237_v24, %v3760_v59 }
0x2418   :  { %v2243_v46 = vadd.f32 %v2239_v8, %v3762_v22 }
0x2419   :  { %v2532_v54 = vmul.f32 -1.442695, %v2242_v36 }
0x241a   :  { %3093 = vtanh.f32 %v2243_v46 }
0x241b   :  { %3095 = vpow2.f32 %v2532_v54 }
0x2424   :  { %v3094_v48 = vpop.eup %3093 }
0x2425   :  { %2259 = vrot.lane.b32.xlu0 %v3094_v48, %s3328_s19  ;;  %v3096_v55 = vpop.eup %3095 }
0x2426   :  { %v2250_v56 = vadd.f32 1.0, %v3096_v55 }
0x2428   :  { %3097 = vrcp.f32 %v2250_v56 }
0x2432   :  { %v3098_v28 = vpop.eup %3097 }
0x2433   :  { %v2257_v59 = vmul.f32 %v3098_v28, %v2156_v38 }
0x2497   :  { %v2260_v34 = vpop.permute.xlu0 %2259 }
0x2498   :  { %v2262_v37 = vmul.f32 %v3098_v28, %v2260_v34 }
0x249a   :  { %2264 = vrot.lane.b32.xlu1 %v2262_v37, %s3328_s19 }
0x249e   :  { %1943 = vrot.lane.b32.xlu1 %v3848_v58, %s3329_s2 }
0x24a2   :  { %2165 = vrot.lane.b32.xlu1 %v2162_v44, %s3329_s2 }
0x24a6   :  { %1499 = vrot.lane.b32.xlu1 %v3769_v18, %s3329_s2 }
0x24aa   :  { %1721 = vrot.lane.b32.xlu1 %v3809_v15, %s3329_s2  ;;  %v2533_v15 = vmul.f32 -1.442695, %v2243_v46 }
0x250c   :  { %v2265_v22 = vpop.permute.xlu1 %2264 }
0x250d   :  { %v2267_v57 = vadd.f32 %v2265_v22, %v2257_v59 }
0x250f   :  { %3099 = vtanh.f32 %v2267_v57 }
0x2510   :  { %v1944_v45 = vpop.permute.xlu1 %1943  ;;  %3101 = vpow2.f32 %v2533_v15 }
0x2511   :  { %1946 = vst.msk [vmem:[#allocation3 + $0x6] sm:$0x3] %vm1496_vm2, %v1944_v45 }
0x2514   :  { %v2166_v50 = vpop.permute.xlu1 %2165 }
0x2515   :  { %2168 = vst.msk [vmem:[#allocation3 + $0x2] sm:$0x3] %vm1496_vm2, %v2166_v50 }
0x2518   :  { %v1500_v53 = vpop.permute.xlu1 %1499 }
0x2519   :  { %v3100_v58 = vpop.eup %3099  ;;  %1502 = vst.msk [vmem:[#allocation3 + $0xe] sm:$0x3] %vm1496_vm2, %v1500_v53 }
0x251a   :  { %2270 = vrot.lane.b32.xlu0 %v3100_v58, %s3328_s19  ;;  %v3102_v61 = vpop.eup %3101 }
0x251b   :  { %v2251_v60 = vadd.f32 1.0, %v3102_v61 }
0x251c   :  { %v1722_v18 = vpop.permute.xlu1 %1721 }
0x251d   :  { %1724 = vst.msk [vmem:[#allocation3 + $0xa] sm:$0x3] %vm1496_vm2, %v1722_v18  ;;  %3103 = vrcp.f32 %v2251_v60 }
0x251e   :  { %2054 = vrot.lane.b32.xlu0 %v3867_v32, %s3329_s2  ;;  %v2889_v32 = vpack.c.bf16 %v2285_v27, %v2284_v47 }
0x2522   :  { %1610 = vrot.lane.b32.xlu0 %v3789_v52, %s3329_s2  ;;  %v2290_v52 = vld [vmem:[%s3951_s9 + $0x10] sm:$0xff] }
0x2523   :  { %v2881_v16 = vpack.c.bf16 %v2291_v7, %v2290_v52 }
0x2525   :  { %2882 = vmatprep.subr.bf16.mxu1 %v2881_v16 }
0x2526   :  { %2884 = vmatpush3.bf16.msra.mxu1 %v2881_v16 }
0x2527   :  { %v3104_v49 = vpop.eup %3103  ;;  %2886 = vmatprep.subr.bf16.mxu1 %v2885_v63 }
0x258c   :  { %v2271_v51 = vpop.permute.xlu0 %2270 }
0x258d   :  { %v2273_v1 = vmul.f32 %v3104_v49, %v2271_v51 }
0x258f   :  { %2274 = vst.msk [vmem:[#allocation2 + $0xe] sm:$0x3] %vm1496_vm2, %v2273_v1  ;;  %2276 = vrot.lane.b32.xlu0 %v2273_v1, %s3329_s2 }
0x2590   :  { %v2055_v2 = vpop.permute.xlu0 %2054 }
0x2591   :  { %2057 = vst.msk [vmem:[#allocation3 + $0x4] sm:$0x3] %vm1496_vm2, %v2055_v2 }
0x2593   :  { %1832 = vrot.lane.b32.xlu0 %v3829_v39, %s3329_s2 }
0x2594   :  { %v1611_v23 = vpop.permute.xlu0 %1610 }
0x2595   :  { %1613 = vst.msk [vmem:[#allocation3 + $0xc] sm:$0x3] %vm1496_vm2, %v1611_v23 }
0x2596   :  { %v2281_v39 = vld [vmem:[#allocation2 + $0x8] sm:$0xff] }
0x2601   :  { %v2277_v3 = vpop.permute.xlu0 %2276 }
0x2602   :  { %2279 = vst.msk [vmem:[#allocation3] sm:$0x3] %vm1496_vm2, %v2277_v3 }
0x2605   :  { %v1833_v12 = vpop.permute.xlu0 %1832 }
0x2606   :  { %1835 = vst.msk [vmem:[#allocation3 + $0x8] sm:$0x3] %vm1496_vm2, %v1833_v12 }
0x2609   :  { %v2286_v4 = vld [vmem:[#allocation3] sm:$0xff] }
0x260a   :  { %2559 = vmatprep.mubr.msk.f32.mxu1 %vm1214_vm1, %v2286_v4 }
0x260d   :  { %v2287_v20 = vld [vmem:[#allocation3 + $0x8] sm:$0xff] }
0x260e   :  { %2560 = vmatmul.mubr.msk.f32.vlgmr.msra.gmra.mrb[18].mxu1 %vm1214_vm1, %v2287_v20 }
0x260f   :  { %2888 = vmatpush3.bf16.msra.mxu1 %v2885_v63  ;;  %2570 = vmatprep.mubr.msk.f32.mxu1 %vm1214_vm1, %v2280_v10 }
0x2610   :  { %2890 = vmatprep.subr.bf16.mxu1 %v2889_v32 }
0x2613   :  { %2892 = vmatpush3.bf16.msra.mxu1 %v2889_v32 }
0x2616   :  { %2571 = vmatmul.mubr.msk.f32.vlgmr.msra.gmra.mrb[18].mxu1 %vm1214_vm1, %v2281_v39 }
0x26e9   :  { %v2572_v13 = vpop.f32.mrb[18].mxu1 }
0x26ea   :  { %v2462_v25 = vadd.f32 %v2572_v13, %v2538_v11  ;;  %v2445_v14 = vpop.f32.mrb[19].mxu1 }
0x26eb   :  { %v2461_v19 = vadd.f32 %v2538_v11, %v2445_v14 }
0x26ec   :  { %2464 = vst [vmem:[#allocation18 + $0x8] sm:$0xff] %v2462_v25 }
0x26ed   :  { %2463 = vst [vmem:[#allocation18] sm:$0xff] %v2461_v19 }
0x26ee   :  { %3292 = shalt.err (!%p3289_p12)
}
0x26ef   :  { %s3293_s10 = scalar_lea.hbm %s3953_s11, 256 }
0x26f0   :  { %p3294_p13 = scmp.ne.s32.totalorder %s3953_s11, %s3293_s10  ;;  %p3297_p0 = scmp.lt.u32.totalorder %s3293_s10, %s3953_s11 }
0x26f2   :  { %p3299_p1 = pnand %p3297_p0, %p3294_p13 }
0x26f4   :  { %3302 = shalt.err (!%p3299_p1)
}
0x26f5   :  { %2476 = dma.vmem_to_hbm [thread:$0]  %s2471_s17, 256, %s3953_s11, [#allocation6], %s3321_s6, %s3321_s6, %s3322_s15  }
0x26f6   :  { %3313 = dma.done.wait [#allocation6], 256  }
0x26f7   :  { %3314 = vsyncadd [#allocation6], 4294967040 }
0x26f8   :  { %2480 = vsyncpa [#allocation5], 1 }
0x26f9   :  { %2481 = vsyncpa [#allocation8], 1 }
0x26fa   :  { %2482 = vsyncpa [#allocation11], 1 }
0x26fb   :  { %2483 = vsyncpa [#allocation14], 1 }
0x26fc   :  { %2484 = vsyncpa [#allocation17], 1 }
0x26fd   :  { %2485 = vsyncpa [#allocation6], 1 }

</bundles_post_ra>
